<compile_context>
chip_gen: v6e
topology: v6e:2x2x1
jax: 0.10.0
libtpu: 0.0.40
codegen_flags: <defaults>
</compile_context>

<pallas_src>
import jax
import jax.numpy as jnp
from jax.experimental import pallas as pl
from jax.experimental.pallas import tpu as pltpu

LANE = 128


# --------------------------------- small helpers ----------------------------------
def _round_up(v, m):
    return ((v + m - 1) // m) * m


def _pad2(a, rows, cols):
    r, c = a.shape
    return jnp.pad(a, ((0, rows - r), (0, cols - c)))


def _pick_tile(n_pad, cap):
    """Largest tile (128-multiple, doubling) that divides n_pad and is <= cap."""
    t = LANE
    while t * 2 <= cap and n_pad % (t * 2) == 0:
        t *= 2
    return t


def _vmem_limit(buffer_bytes):
    """Buffer-derived VMEM budget with headroom; capped at 64 MiB (v7x physical)."""
    need = int(2.5 * buffer_bytes) + (8 << 20)
    return int(min(max(need, 16 << 20), 64 << 20))


# ---------------------------- fused small-graph kernel ----------------------------
def make_fused_kernel(n_valid):
    """Whole forward (both GCN layers + masked per-row squared error) in one kernel."""

    def kernel(a_ref, x_ref, w1_ref, b1_ref, w2_ref, b2_ref, xhat_ref, sqerr_ref):
        a = a_ref[...]                                    # bf16 [n_pad, n_pad]
        x_f32 = x_ref[...]                                # f32  [n_pad, f_pad]
        x_b = x_f32.astype(jnp.bfloat16)

        # Layer 1: H = ReLU(A_hat @ (X @ W1) + b1)
        xw1 = jnp.dot(x_b, w1_ref[...],
                      preferred_element_type=jnp.float32).astype(jnp.bfloat16)
        h = jnp.maximum(jnp.dot(a, xw1, preferred_element_type=jnp.float32)
                        + b1_ref[...], 0.0).astype(jnp.bfloat16)

        # Layer 2: X_hat = A_hat @ (H @ W2) + b2
        hw2 = jnp.dot(h, w2_ref[...],
                      preferred_element_type=jnp.float32).astype(jnp.bfloat16)
        y = jnp.dot(a, hw2, preferred_element_type=jnp.float32) + b2_ref[...]
        xhat_ref[...] = y.astype(xhat_ref.dtype)

        # Per-row squared error.  Padded feature columns are exactly zero in both y and x
        # (zero-padded weights / biases / inputs); padded node rows are masked out.
        row = jax.lax.broadcasted_iota(jnp.int32, y.shape, 0)
        valid = (row < n_valid).astype(jnp.float32)
        diff = (y - x_f32) * valid
        sqerr_ref[...] = jnp.sum(diff * diff, axis=1, keepdims=True)

    return kernel


def _fused_forward(a_b, x_f32, w1_b, b1_f32, w2_b, b2_f32, n_valid):
    n_pad = a_b.shape[0]
    f_pad = x_f32.shape[1]
    h_pad = w1_b.shape[1]
    buf_bytes = (a_b.size * 2 + x_f32.size * 4
                 + w1_b.size * 2 + w2_b.size * 2
                 + (b1_f32.size + b2_f32.size) * 4
                 + n_pad * f_pad * 4 + n_pad * 4           # outputs
                 + 4 * n_pad * max(f_pad, h_pad) * 4)      # in-kernel temporaries
    return pl.pallas_call(
        make_fused_kernel(n_valid),
        out_shape=(
            jax.ShapeDtypeStruct((n_pad, f_pad), jnp.float32),   # X_hat (padded)
            jax.ShapeDtypeStruct((n_pad, 1), jnp.float32),       # per-row squared error
        ),
        grid_spec=pltpu.PrefetchScalarGridSpec(
            num_scalar_prefetch=0,
            grid=(1,),
            in_specs=[
                pl.BlockSpec((n_pad, n_pad), lambda i: (0, 0)),  # A_hat (full block)
                pl.BlockSpec((n_pad, f_pad), lambda i: (0, 0)),  # X (f32)
                pl.BlockSpec((f_pad, h_pad), lambda i: (0, 0)),  # W1
                pl.BlockSpec((1, h_pad), lambda i: (0, 0)),      # b1
                pl.BlockSpec((h_pad, f_pad), lambda i: (0, 0)),  # W2
                pl.BlockSpec((1, f_pad), lambda i: (0, 0)),      # b2
            ],
            out_specs=(
                pl.BlockSpec((n_pad, f_pad), lambda i: (0, 0)),
                pl.BlockSpec((n_pad, 1), lambda i: (0, 0)),
            ),
        ),
        compiler_params=pltpu.CompilerParams(
            dimension_semantics=("arbitrary",),
            vmem_limit_bytes=_vmem_limit(buf_bytes),
        ),
        cost_estimate=pl.CostEstimate(
            flops=2 * n_pad * n_pad * (h_pad + f_pad) + 4 * n_pad * f_pad * h_pad,
            transcendentals=0,
            bytes_accessed=2 * n_pad * n_pad + 8 * n_pad * f_pad
                           + 4 * f_pad * h_pad,
        ),
    )(a_b, x_f32, w1_b, b1_f32, w2_b, b2_f32)


# ----------------------------- tiled layer-1 kernel -------------------------------
def make_layer1_kernel(tile_k):
    """Row tile of HW2 = ReLU(A_hat @ (X @ W1) + b1) @ W2 with K accumulation (P1+P3).

    W1/W2/X are VMEM-resident, so the only HBM stream here is A_hat itself.
    """

    def kernel(a_ref, x_ref, w1_ref, b1_ref, w2_ref, hw2_ref, acc_ref):
        # program_id / num_programs hoisted to top level (not legal inside pl.when bodies).
        k = pl.program_id(1)
        nk = pl.num_programs(1)

        @pl.when(k == 0)
        def _():
            acc_ref[...] = jnp.zeros_like(acc_ref)

        x_tile = x_ref[pl.ds(k * tile_k, tile_k), :]              # bf16 [tile_k, f_pad]
        z = jnp.dot(x_tile, w1_ref[...],
                    preferred_element_type=jnp.float32).astype(jnp.bfloat16)
        acc_ref[...] += jnp.dot(a_ref[...], z, preferred_element_type=jnp.float32)

        # Epilogue: bias + ReLU + fused (H @ W2), hoisted out of the K loop.
        @pl.when(k == nk - 1)
        def _():
            h = jnp.maximum(acc_ref[...] + b1_ref[...], 0.0).astype(jnp.bfloat16)
            hw2_ref[...] = jnp.dot(
                h, w2_ref[...], preferred_element_type=jnp.float32
            ).astype(hw2_ref.dtype)

    return kernel


def _layer1(a_b, x_b, w1_b, b1_f32, w2_b, tile_m, tile_k):
    n_pad = a_b.shape[0]
    f_pad = x_b.shape[1]
    h_pad = w1_b.shape[1]
    buf_bytes = (2 * tile_m * tile_k * 2 + n_pad * f_pad * 2
                 + f_pad * h_pad * 2 + h_pad * f_pad * 2 + h_pad * 4
                 + 2 * tile_m * f_pad * 2 + tile_m * h_pad * 4)
    return pl.pallas_call(
        make_layer1_kernel(tile_k),
        out_shape=jax.ShapeDtypeStruct((n_pad, f_pad), jnp.bfloat16),
        grid_spec=pltpu.PrefetchScalarGridSpec(
            num_scalar_prefetch=0,
            grid=(n_pad // tile_m, n_pad // tile_k),
            in_specs=[
                pl.BlockSpec((tile_m, tile_k), lambda i, k: (i, k)),  # A_hat tile (streamed)
                pl.BlockSpec((n_pad, f_pad), lambda i, k: (0, 0)),    # X (VMEM-resident)
                pl.BlockSpec((f_pad, h_pad), lambda i, k: (0, 0)),    # W1 (resident)
                pl.BlockSpec((1, h_pad), lambda i, k: (0, 0)),        # b1
                pl.BlockSpec((h_pad, f_pad), lambda i, k: (0, 0)),    # W2 (resident)
            ],
            out_specs=pl.BlockSpec((tile_m, f_pad), lambda i, k: (i, 0)),
            scratch_shapes=[pltpu.VMEM((tile_m, h_pad), jnp.float32)],
        ),
        compiler_params=pltpu.CompilerParams(
            dimension_semantics=("parallel", "arbitrary"),
            vmem_limit_bytes=_vmem_limit(buf_bytes),
        ),
        cost_estimate=pl.CostEstimate(
            flops=2 * n_pad * n_pad * h_pad
                  + 2 * (n_pad // tile_m) * n_pad * f_pad * h_pad
                  + 2 * n_pad * h_pad * f_pad,
            transcendentals=0,
            bytes_accessed=2 * n_pad * n_pad + 4 * n_pad * f_pad
                           + 4 * f_pad * h_pad,
        ),
    )(a_b, x_b, w1_b, b1_f32, w2_b)


# ------------------------- tiled layer-2 + loss kernel ----------------------------
def make_layer2_kernel(n_valid, tile_m, tile_k):
    """Row tile of X_hat = A_hat @ Z + b2, plus masked per-row squared error vs X."""

    def kernel(a_ref, z_ref, b2_ref, x_ref, xhat_ref, sqerr_ref, acc_ref):
        # Hoisted: previously pl.program_id(0) was called inside the pl.when body (broken).
        i = pl.program_id(0)
        k = pl.program_id(1)
        nk = pl.num_programs(1)

        @pl.when(k == 0)
        def _():
            acc_ref[...] = jnp.zeros_like(acc_ref)

        z_tile = z_ref[pl.ds(k * tile_k, tile_k), :]              # bf16 [tile_k, f_pad]
        acc_ref[...] += jnp.dot(a_ref[...], z_tile, preferred_element_type=jnp.float32)

        @pl.when(k == nk - 1)
        def _():
            y = acc_ref[...] + b2_ref[...]
            xhat_ref[...] = y.astype(xhat_ref.dtype)
            row = i * tile_m + jax.lax.broadcasted_iota(jnp.int32, y.shape, 0)
            valid = (row < n_valid).astype(jnp.float32)
            diff = (y - x_ref[...]) * valid
            sqerr_ref[...] = jnp.sum(diff * diff, axis=1, keepdims=True)

    return kernel


def _layer2_loss(a_b, z_b, b2_f32, x_f32, n_valid, tile_m, tile_k):
    n_pad = a_b.shape[0]
    f_pad = z_b.shape[1]
    buf_bytes = (2 * tile_m * tile_k * 2 + n_pad * f_pad * 2 + f_pad * 4
                 + 2 * tile_m * f_pad * 4 + 2 * tile_m * f_pad * 4
                 + tile_m * f_pad * 4)
    return pl.pallas_call(
        make_layer2_kernel(n_valid, tile_m, tile_k),
        out_shape=(
            jax.ShapeDtypeStruct((n_pad, f_pad), jnp.float32),   # X_hat (padded)
            jax.ShapeDtypeStruct((n_pad, 1), jnp.float32),       # per-row squared error
        ),
        grid_spec=pltpu.PrefetchScalarGridSpec(
            num_scalar_prefetch=0,
            grid=(n_pad // tile_m, n_pad // tile_k),
            in_specs=[
                pl.BlockSpec((tile_m, tile_k), lambda i, k: (i, k)),  # A_hat tile (streamed)
                pl.BlockSpec((n_pad, f_pad), lambda i, k: (0, 0)),    # Z = H@W2 (resident)
                pl.BlockSpec((1, f_pad), lambda i, k: (0, 0)),        # b2
                pl.BlockSpec((tile_m, f_pad), lambda i, k: (i, 0)),   # X (f32, for loss)
            ],
            out_specs=(
                pl.BlockSpec((tile_m, f_pad), lambda i, k: (i, 0)),
                pl.BlockSpec((tile_m, 1), lambda i, k: (i, 0)),
            ),
            scratch_shapes=[pltpu.VMEM((tile_m, f_pad), jnp.float32)],
        ),
        compiler_params=pltpu.CompilerParams(
            dimension_semantics=("parallel", "arbitrary"),
            vmem_limit_bytes=_vmem_limit(buf_bytes),
        ),
        cost_estimate=pl.CostEstimate(
            flops=2 * n_pad * n_pad * f_pad + 4 * n_pad * f_pad,
            transcendentals=0,
            bytes_accessed=2 * n_pad * n_pad + 14 * n_pad * f_pad,
        ),
    )(a_b, z_b, b2_f32, x_f32)


# ------------------------------- JAX glue / API ------------------------------------
def normalized_adjacency(edge_index, num_nodes):
    """A_hat = D^{-1/2} (A + I) D^{-1/2}, dense float32 [N, N] (scatter glue, plain JAX)."""
    src = edge_index[0]
    dst = edge_index[1]
    a = jnp.zeros((num_nodes, num_nodes), jnp.float32)
    a = a.at[src, dst].set(1.0)          # duplicate edges collapse to a binary adjacency
    a = a + jnp.eye(num_nodes, dtype=jnp.float32)        # self loops
    deg = jnp.sum(a, axis=1)
    d_inv_sqrt = jnp.where(deg > 0, 1.0 / jnp.sqrt(deg), 0.0)
    return a * d_inv_sqrt[:, None] * d_inv_sqrt[None, :]


def gcn_anomaly_detector(x, edge_index, params, *, fused_max_nodes=1024, max_tile=512):
    """Returns (x_hat, loss) exactly like the PyTorch module's forward."""
    n, f = x.shape
    h_dim = params["w1"].shape[1]

    f_pad = _round_up(f, LANE)
    h_pad = _round_up(h_dim, LANE)
    n_pad = _round_up(n, LANE)          # pad only to lane granularity (no lcm blow-up)

    # Build + pad the normalized adjacency; bf16 MXU operand halves its HBM bytes.
    a_hat = normalized_adjacency(edge_index, n)
    a_b = _pad2(a_hat, n_pad, n_pad).astype(jnp.bfloat16)

    # Lane-pad features / weights / biases: bf16 matmul operands, f32 epilogue operands.
    x_f32 = _pad2(x, n_pad, f_pad)
    w1_b = _pad2(params["w1"], f_pad, h_pad).astype(jnp.bfloat16)
    w2_b = _pad2(params["w2"], h_pad, f_pad).astype(jnp.bfloat16)
    b1_p = _pad2(params["b1"], 1, h_pad)
    b2_p = _pad2(params["b2"], 1, f_pad)

    if n_pad <= fused_max_nodes:
        # Small graph: whole working set fits in VMEM -> single fused kernel (no
        # intermediate HBM round trips, single launch).
        xhat_pad, sqerr_rows = _fused_forward(a_b, x_f32, w1_b, b1_p, w2_b, b2_p, n)
    else:
        # Tiled path: stream A_hat once per layer; X / Z / weights VMEM-resident.
        tile_m = _pick_tile(n_pad, min(max_tile, max(LANE, n_pad // 2)))  # >=2 row tiles
        tile_k = _pick_tile(n_pad, min(max_tile, n_pad))
        x_b = x_f32.astype(jnp.bfloat16)
        hw2 = _layer1(a_b, x_b, w1_b, b1_p, w2_b, tile_m, tile_k)         # [n_pad, f_pad] bf16
        xhat_pad, sqerr_rows = _layer2_loss(a_b, hw2, b2_p, x_f32, n, tile_m, tile_k)

    x_hat = xhat_pad[:n, :f]
    loss = jnp.sum(sqerr_rows) / float(n * f)
    return x_hat, loss


def init_params(key, in_features, hidden):
    """Deterministic Glorot-uniform-ish init for the 2-layer GCN autoencoder."""
    k1, k2 = jax.random.split(key)
    lim1 = (6.0 / (in_features + hidden)) ** 0.5
    lim2 = (6.0 / (hidden + in_features)) ** 0.5
    return {
        "w1": jax.random.uniform(k1, (in_features, hidden), jnp.float32, -lim1, lim1),
        "b1": jnp.zeros((1, hidden), jnp.float32),
        "w2": jax.random.uniform(k2, (hidden, in_features), jnp.float32, -lim2, lim2),
        "b2": jnp.zeros((1, in_features), jnp.float32),
    }


def reference_forward(x, a_hat, params):
    """Pure-JAX reference with the same bf16-operand / f32-accumulate precision plan."""
    bf16, f32 = jnp.bfloat16, jnp.float32
    a_b = a_hat.astype(bf16)
    x_b = x.astype(bf16)
    w1_b = params["w1"].astype(bf16)
    w2_b = params["w2"].astype(bf16)
    xw1 = jnp.dot(x_b, w1_b, preferred_element_type=f32).astype(bf16)
    h = jnp.maximum(jnp.dot(a_b, xw1, preferred_element_type=f32) + params["b1"], 0.0)
    h = h.astype(bf16)
    hw2 = jnp.dot(h, w2_b, preferred_element_type=f32).astype(bf16)
    xhat = jnp.dot(a_b, hw2, preferred_element_type=f32) + params["b2"]
    loss = jnp.mean((xhat - x) ** 2)
    return xhat, loss


if __name__ == "__main__":
    N_NODES = 200     # deliberately not a multiple of 128 -> exercises padding + row masking
    IN_FEATS = 8      # lane-padded to 128 inside the wrapper
    HIDDEN = 32       # lane-padded to 128 inside the wrapper
    N_EDGES = 1024

    root = jax.random.PRNGKey(0)
    kx, ke, kp = jax.random.split(root, 3)

    x = jax.random.normal(kx, (N_NODES, IN_FEATS), jnp.float32)
    edge_index = jax.random.randint(ke, (2, N_EDGES), 0, N_NODES, jnp.int32)
    params = init_params(kp, IN_FEATS, HIDDEN)

    # Fused small-graph path (default dispatch at this size).
    x_hat, loss = gcn_anomaly_detector(x, edge_index, params)
    # Tiled general path, forced, on the same inputs.
    x_hat_t, loss_t = gcn_anomaly_detector(x, edge_index, params, fused_max_nodes=0)
    jax.block_until_ready((x_hat, loss, x_hat_t, loss_t))

    # Pure-JAX reference check (same bf16/f32 precision plan, no Pallas).
    a_hat = normalized_adjacency(edge_index, N_NODES)
    xhat_ref, loss_ref = reference_forward(x, a_hat, params)

    assert x_hat.shape == (N_NODES, IN_FEATS)
    assert x_hat_t.shape == (N_NODES, IN_FEATS)
    for xh, ls in ((x_hat, loss), (x_hat_t, loss_t)):
        assert jnp.allclose(xh, xhat_ref, atol=2e-2, rtol=2e-2)
        assert jnp.allclose(ls, loss_ref, atol=1e-4, rtol=2e-2)

    print("KERNEL_OK")
</pallas_src>

<mosaic_0001>
module attributes {stable_mosaic.version = 11 : i64} {
  func.func @kernel(%arg0: i32, %arg1: memref<256x256xbf16, #tpu.memory_space<vmem>>, %arg2: memref<256x128xf32, #tpu.memory_space<vmem>>, %arg3: memref<128x128xbf16, #tpu.memory_space<vmem>>, %arg4: memref<1x128xf32, #tpu.memory_space<vmem>>, %arg5: memref<128x128xbf16, #tpu.memory_space<vmem>>, %arg6: memref<1x128xf32, #tpu.memory_space<vmem>>, %arg7: memref<256x128xf32, #tpu.memory_space<vmem>>, %arg8: memref<256x1xf32, #tpu.memory_space<vmem>>) attributes {dimension_semantics = [#tpu.dimension_semantics<arbitrary>], iteration_bounds = array<i64: 1>, scalar_prefetch = 0 : i64, scratch_operands = 0 : i64, tpu.core_type = #tpu.core_type<tc>, window_params = [{pipeline_mode = #tpu.pipeline_mode<synchronous>, transform_indices = @transform_0, window_bounds = array<i64: 256, 256>}, {pipeline_mode = #tpu.pipeline_mode<synchronous>, transform_indices = @transform_1, window_bounds = array<i64: 256, 128>}, {pipeline_mode = #tpu.pipeline_mode<synchronous>, transform_indices = @transform_2, window_bounds = array<i64: 128, 128>}, {pipeline_mode = #tpu.pipeline_mode<synchronous>, transform_indices = @transform_3, window_bounds = array<i64: 1, 128>}, {pipeline_mode = #tpu.pipeline_mode<synchronous>, transform_indices = @transform_4, window_bounds = array<i64: 128, 128>}, {pipeline_mode = #tpu.pipeline_mode<synchronous>, transform_indices = @transform_5, window_bounds = array<i64: 1, 128>}, {pipeline_mode = #tpu.pipeline_mode<synchronous>, transform_indices = @transform_6, window_bounds = array<i64: 256, 128>}, {pipeline_mode = #tpu.pipeline_mode<synchronous>, transform_indices = @transform_7, window_bounds = array<i64: 256, 1>}]} {
    %c0 = arith.constant 0 : index
    %c0_0 = arith.constant 0 : index
    %0 = vector.load %arg1[%c0, %c0_0] : memref<256x256xbf16, #tpu.memory_space<vmem>>, vector<256x256xbf16>
    %c0_1 = arith.constant 0 : index
    %c0_2 = arith.constant 0 : index
    %1 = vector.load %arg2[%c0_1, %c0_2] : memref<256x128xf32, #tpu.memory_space<vmem>>, vector<256x128xf32>
    %2 = arith.truncf %1 : vector<256x128xf32> to vector<256x128xbf16>
    %c0_3 = arith.constant 0 : index
    %c0_4 = arith.constant 0 : index
    %3 = vector.load %arg3[%c0_3, %c0_4] : memref<128x128xbf16, #tpu.memory_space<vmem>>, vector<128x128xbf16>
    %cst = arith.constant dense<0.000000e+00> : vector<256x128xf32>
    %4 = tpu.matmul %2, %3, %cst {dimension_numbers = #tpu.dot_dimension_numbers<[1], [0], [0], [1], [0, 0, 1, 1], [], []>} : vector<256x128xbf16>, vector<128x128xbf16>, vector<256x128xf32> -> vector<256x128xf32>
    %5 = arith.truncf %4 : vector<256x128xf32> to vector<256x128xbf16>
    %cst_5 = arith.constant dense<0.000000e+00> : vector<256x128xf32>
    %6 = tpu.matmul %0, %5, %cst_5 {dimension_numbers = #tpu.dot_dimension_numbers<[1], [0], [0], [1], [0, 0, 1, 1], [], []>} : vector<256x256xbf16>, vector<256x128xbf16>, vector<256x128xf32> -> vector<256x128xf32>
    %c0_6 = arith.constant 0 : index
    %c0_7 = arith.constant 0 : index
    %7 = vector.load %arg4[%c0_6, %c0_7] : memref<1x128xf32, #tpu.memory_space<vmem>>, vector<1x128xf32>
    %8 = vector.broadcast %7 : vector<1x128xf32> to vector<256x128xf32>
    %9 = arith.addf %6, %8 : vector<256x128xf32>
    %cst_8 = arith.constant 0.000000e+00 : f32
    %10 = vector.broadcast %cst_8 : f32 to vector<256x128xf32>
    %11 = arith.maximumf %9, %10 : vector<256x128xf32>
    %12 = arith.truncf %11 : vector<256x128xf32> to vector<256x128xbf16>
    %c0_9 = arith.constant 0 : index
    %c0_10 = arith.constant 0 : index
    %13 = vector.load %arg5[%c0_9, %c0_10] : memref<128x128xbf16, #tpu.memory_space<vmem>>, vector<128x128xbf16>
    %cst_11 = arith.constant dense<0.000000e+00> : vector<256x128xf32>
    %14 = tpu.matmul %12, %13, %cst_11 {dimension_numbers = #tpu.dot_dimension_numbers<[1], [0], [0], [1], [0, 0, 1, 1], [], []>} : vector<256x128xbf16>, vector<128x128xbf16>, vector<256x128xf32> -> vector<256x128xf32>
    %15 = arith.truncf %14 : vector<256x128xf32> to vector<256x128xbf16>
    %cst_12 = arith.constant dense<0.000000e+00> : vector<256x128xf32>
    %16 = tpu.matmul %0, %15, %cst_12 {dimension_numbers = #tpu.dot_dimension_numbers<[1], [0], [0], [1], [0, 0, 1, 1], [], []>} : vector<256x256xbf16>, vector<256x128xbf16>, vector<256x128xf32> -> vector<256x128xf32>
    %c0_13 = arith.constant 0 : index
    %c0_14 = arith.constant 0 : index
    %17 = vector.load %arg6[%c0_13, %c0_14] : memref<1x128xf32, #tpu.memory_space<vmem>>, vector<1x128xf32>
    %18 = vector.broadcast %17 : vector<1x128xf32> to vector<256x128xf32>
    %19 = arith.addf %16, %18 : vector<256x128xf32>
    %c0_15 = arith.constant 0 : index
    %c0_16 = arith.constant 0 : index
    %20 = vector.load %arg7[%c0_15, %c0_16] : memref<256x128xf32, #tpu.memory_space<vmem>>, vector<256x128xf32>
    tpu.vector_store %arg7[%c0_15, %c0_16], %19 {strides = array<i32>} : memref<256x128xf32, #tpu.memory_space<vmem>>, vector<256x128xf32>,
    %21 = tpu.iota {dimensions = array<i32: 0>} : vector<256x128xi32>
    %c200_i32 = arith.constant 200 : i32
    %22 = vector.broadcast %c200_i32 : i32 to vector<256x128xi32>
    %23 = arith.cmpi slt, %21, %22 : vector<256x128xi32>
    %24 = arith.extui %23 : vector<256x128xi1> to vector<256x128xi32>
    %25 = arith.sitofp %24 : vector<256x128xi32> to vector<256x128xf32>
    %26 = arith.subf %19, %1 : vector<256x128xf32>
    %27 = arith.mulf %26, %25 : vector<256x128xf32>
    %28 = arith.mulf %27, %27 : vector<256x128xf32>
    %cst_17 = arith.constant dense<0.000000e+00> : vector<256xf32>
    %29 = vector.multi_reduction <add>, %28, %cst_17 [1] : vector<256x128xf32> to vector<256xf32>
    %30 = vector.shape_cast %29 : vector<256xf32> to vector<256x1xf32>
    %c0_18 = arith.constant 0 : index
    %c0_19 = arith.constant 0 : index
    %31 = vector.load %arg8[%c0_18, %c0_19] : memref<256x1xf32, #tpu.memory_space<vmem>>, vector<256x1xf32>
    tpu.vector_store %arg8[%c0_18, %c0_19], %30 {strides = array<i32>} : memref<256x1xf32, #tpu.memory_space<vmem>>, vector<256x1xf32>,
    return
  }
  func.func @transform_0(%arg0: i32) -> (i32, i32) {
    %c0_i32 = arith.constant 0 : i32
    %c0_i32_0 = arith.constant 0 : i32
    %c0_i32_1 = arith.constant 0 : i32
    return %c0_i32, %c0_i32_0 : i32, i32
  }
  func.func @transform_1(%arg0: i32) -> (i32, i32) {
    %c0_i32 = arith.constant 0 : i32
    %c0_i32_0 = arith.constant 0 : i32
    %c0_i32_1 = arith.constant 0 : i32
    return %c0_i32, %c0_i32_0 : i32, i32
  }
  func.func @transform_2(%arg0: i32) -> (i32, i32) {
    %c0_i32 = arith.constant 0 : i32
    %c0_i32_0 = arith.constant 0 : i32
    %c0_i32_1 = arith.constant 0 : i32
    return %c0_i32, %c0_i32_0 : i32, i32
  }
  func.func @transform_3(%arg0: i32) -> (i32, i32) {
    %c0_i32 = arith.constant 0 : i32
    %c0_i32_0 = arith.constant 0 : i32
    %c0_i32_1 = arith.constant 0 : i32
    return %c0_i32, %c0_i32_0 : i32, i32
  }
  func.func @transform_4(%arg0: i32) -> (i32, i32) {
    %c0_i32 = arith.constant 0 : i32
    %c0_i32_0 = arith.constant 0 : i32
    %c0_i32_1 = arith.constant 0 : i32
    return %c0_i32, %c0_i32_0 : i32, i32
  }
  func.func @transform_5(%arg0: i32) -> (i32, i32) {
    %c0_i32 = arith.constant 0 : i32
    %c0_i32_0 = arith.constant 0 : i32
    %c0_i32_1 = arith.constant 0 : i32
    return %c0_i32, %c0_i32_0 : i32, i32
  }
  func.func @transform_6(%arg0: i32) -> (i32, i32) {
    %c0_i32 = arith.constant 0 : i32
    %c0_i32_0 = arith.constant 0 : i32
    %c0_i32_1 = arith.constant 0 : i32
    return %c0_i32, %c0_i32_0 : i32, i32
  }
  func.func @transform_7(%arg0: i32) -> (i32, i32) {
    %c0_i32 = arith.constant 0 : i32
    %c0_i32_0 = arith.constant 0 : i32
    %c0_i32_1 = arith.constant 0 : i32
    return %c0_i32, %c0_i32_0 : i32, i32
  }
}

</mosaic_0001>

<bundles_post_ra>
// kernel: tpu_custom_call.1
= control target key start
LH: loop header
LB: loop body
LE: loop exit
PB: predicated region body
PF: predicated region fallthrough
CT: control target
= control target key end

     0   :  { %13 = vsyncpa [#allocation3], 0  ;;  %s2611_s0 = inlined_call_operand.hbm [shape: bf16[256,256], index: 0, kind: input, shape index: {}]   ;;  %s2612_s1 = inlined_call_operand.hbm [shape: f32[256,128], index: 1, kind: input, shape index: {}]   ;;  %s2613_s2 = inlined_call_operand.hbm [shape: bf16[128,128], index: 2, kind: input, shape index: {}]   ;;  %s2614_s3 = inlined_call_operand.vmem [shape: f32[1,128], index: 3, kind: input, shape index: {}]   ;;  %s2615_s4 = inlined_call_operand.hbm [shape: bf16[128,128], index: 4, kind: input, shape index: {}]   ;;  %s2616_s5 = inlined_call_operand.vmem [shape: f32[1,128], index: 5, kind: input, shape index: {}]   ;;  %s2617_s6 = inlined_call_operand.hbm [shape: f32[256,128], index: 6, kind: output, shape index: {0}]   ;;  %s2618_s7 = inlined_call_operand.vmem [shape: f32[256,1], index: 7, kind: output, shape index: {1}]  }
   0x1   :  { %14 = vsyncpa [#allocation6], 0 }
   0x2   :  { %15 = vsyncpa [#allocation9], 0 }
   0x3   :  { %16 = vsyncpa [#allocation4], 0  ;;  %s2196_s24 = smov [#allocation5]   ;;  %s2197_s26 = smov [#allocation2]  }
   0x4   :  { %s34_s25 = sshll.u32 %s2196_s24, 4  ;;  %s22_s27 = sshll.u32 %s2197_s26, 4  ;;  %s35_s25 = int_to_ptr.vmem [resolvable:$true] %s34_s25  ;;  %s23_s27 = int_to_ptr.vmem [resolvable:$true] %s22_s27 }
   0x5   :  { %s2096_s28 = scalar_lea.vmem %s35_s25, 4096  ;;  %p2101_p1 = scmp.lt.s32.totalorder %s35_s25, %s35_s25 }
   0x6   :  { %p2097_p0 = scmp.ne.s32.totalorder %s35_s25, %s2096_s28  ;;  %p2102_p2 = scmp.lt.s32.totalorder %s2096_s28, %s2096_s28 }
   0x8   :  { %p2103_p3 = por %p2102_p2, %p2101_p1 }
   0xa   :  { %p2104_p4 = pnand %p2103_p3, %p2097_p0 }
   0xc   :  { %2107 = shalt.err (!%p2104_p4)
}
   0xd   :  { %s2198_s29 = smov 128   ;;  %s2199_s30 = smov 8  }
   0xe   :  { %40 = dma.hbm_to_vmem [thread:$0]  %s2612_s1, 4096, %s35_s25, [#allocation6], %s2198_s29, %s2198_s29, %s2199_s30  }
   0xf   :  { %s2116_s10 = scalar_lea.vmem %s23_s27, 4096  ;;  %p2121_p6 = scmp.lt.s32.totalorder %s23_s27, %s23_s27 }
  0x10   :  { %p2117_p5 = scmp.ne.s32.totalorder %s23_s27, %s2116_s10  ;;  %p2122_p7 = scmp.lt.s32.totalorder %s2116_s10, %s2116_s10 }
  0x12   :  { %p2123_p8 = por %p2122_p7, %p2121_p6 }
  0x14   :  { %p2124_p9 = pnand %p2123_p8, %p2117_p5 }
  0x16   :  { %2127 = shalt.err (!%p2124_p9)
}
  0x17   :  { %28 = dma.hbm_to_vmem [thread:$0]  %s2611_s0, 4096, %s23_s27, [#allocation3], %s2198_s29, %s2198_s29, %s2199_s30  }
  0x18   :  { %s2200_s13 = smov [#allocation7]  }
  0x19   :  { %s46_s14 = sshll.u32 %s2200_s13, 4  ;;  %s47_s14 = int_to_ptr.vmem [resolvable:$true] %s46_s14 }
  0x1a   :  { %s2136_s15 = scalar_lea.vmem %s47_s14, 1024  ;;  %p2141_p11 = scmp.lt.s32.totalorder %s47_s14, %s47_s14 }
  0x1b   :  { %p2137_p10 = scmp.ne.s32.totalorder %s47_s14, %s2136_s15  ;;  %p2142_p12 = scmp.lt.s32.totalorder %s2136_s15, %s2136_s15 }
  0x1d   :  { %p2143_p13 = por %p2142_p12, %p2141_p11 }
  0x1f   :  { %p2144_p0 = pnand %p2143_p13, %p2137_p10 }
  0x21   :  { %2147 = shalt.err (!%p2144_p0)
}
  0x22   :  { %s2201_s1 = smov 64   ;;  %s2202_s16 = smov 4  }
  0x23   :  { %52 = dma.hbm_to_vmem [thread:$0]  %s2613_s2, 1024, %s47_s14, [#allocation6], %s2201_s1, %s2201_s1, %s2202_s16  }
  0x24   :  { %s2203_s19 = smov [#allocation8]  }
  0x25   :  { %s60_s20 = sshll.u32 %s2203_s19, 4  ;;  %s61_s20 = int_to_ptr.vmem [resolvable:$true] %s60_s20 }
  0x26   :  { %s2156_s0 = scalar_lea.vmem %s61_s20, 1024  ;;  %p2161_p2 = scmp.lt.s32.totalorder %s61_s20, %s61_s20 }
  0x27   :  { %p2157_p1 = scmp.ne.s32.totalorder %s61_s20, %s2156_s0  ;;  %p2162_p3 = scmp.lt.s32.totalorder %s2156_s0, %s2156_s0 }
  0x29   :  { %p2163_p4 = por %p2162_p3, %p2161_p2 }
  0x2b   :  { %p2164_p5 = pnand %p2163_p4, %p2157_p1 }
  0x2d   :  { %2167 = shalt.err (!%p2164_p5)
}
  0x2e   :  { %66 = dma.hbm_to_vmem [thread:$0]  %s2615_s4, 1024, %s61_s20, [#allocation9], %s2201_s1, %s2201_s1, %s2202_s16  }
  0x2f   :  { %2188 = dma.done.wait [#allocation3], 4096  }
  0x30   :  { %2189 = vsyncadd [#allocation3], 4294963200 }
  0x31   :  { %2190 = dma.done.wait [#allocation6], 5120  }
  0x32   :  { %2191 = vsyncadd [#allocation6], 4294962176 }
  0x33   :  { %2192 = dma.done.wait [#allocation9], 1024  }
  0x34   :  { %2193 = vsyncadd [#allocation9], 4294966272  ;;  %v1992_v0 = vld [vmem:[#allocation7 + $0x38] sm:$0xff]   ;;  %v1993_v1 = vld [vmem:[#allocation7 + $0x30] sm:$0xff]   ;;  %vm1509_vm0 = vcmask 7168  }
  0x35   :  { %1887 = vmatprep.subr.bf16.mxu1 %v1992_v0  ;;  %v1994_v2 = vld [vmem:[#allocation7 + $0x28] sm:$0xff]   ;;  %v1995_v3 = vld [vmem:[#allocation7 + $0x20] sm:$0xff]   ;;  %v1996_v7 = vld [vmem:[#allocation7 + $0x18] sm:$0xff]  }
  0x36   :  { %1888 = vmatpush3.bf16.msra.mxu1 %v1992_v0  ;;  %v114_v4 = vld [vmem:[#allocation5] sm:$0xff]  ;;  %v115_v5 = vld [vmem:[#allocation5 + $0x8] sm:$0xff]  ;;  %v1997_v8 = vld [vmem:[#allocation7 + $0x10] sm:$0xff]  }
  0x37   :  { %1889 = vmatprep.subr.bf16.mxu1 %v1993_v1  ;;  %v146_v6 = vpack.c.bf16 %v115_v5, %v114_v4  ;;  %v1998_v9 = vld [vmem:[#allocation7 + $0x8] sm:$0xff]   ;;  %v1999_v10 = vld [vmem:[#allocation7] sm:$0xff]   ;;  %v116_v11 = vld [vmem:[#allocation5 + $0x10] sm:$0xff] }
  0x38   :  { %v117_v12 = vld [vmem:[#allocation5 + $0x18] sm:$0xff]  ;;  %v118_v13 = vld [vmem:[#allocation5 + $0x20] sm:$0xff]  ;;  %v119_v14 = vld [vmem:[#allocation5 + $0x28] sm:$0xff] }
  0x39   :  { %1903 = vmatprep.mubr.bf16.mxu1 %v146_v6  ;;  %v147_v15 = vpack.c.bf16 %v117_v12, %v116_v11  ;;  %v148_v16 = vpack.c.bf16 %v119_v14, %v118_v13  ;;  %v120_v17 = vld [vmem:[#allocation5 + $0x30] sm:$0xff]  ;;  %v121_v18 = vld [vmem:[#allocation5 + $0x38] sm:$0xff]  ;;  %v122_v19 = vld [vmem:[#allocation5 + $0x40] sm:$0xff] }
  0x3a   :  { %1890 = vmatpush3.bf16.msra.mxu1 %v1993_v1  ;;  %v123_v20 = vld [vmem:[#allocation5 + $0x48] sm:$0xff]  ;;  %v149_v21 = vpack.c.bf16 %v121_v18, %v120_v17  ;;  %v124_v23 = vld [vmem:[#allocation5 + $0x50] sm:$0xff]  ;;  %v125_v24 = vld [vmem:[#allocation5 + $0x58] sm:$0xff] }
  0x3b   :  { %1891 = vmatprep.subr.bf16.mxu1 %v1994_v2  ;;  %v150_v22 = vpack.c.bf16 %v123_v20, %v122_v19  ;;  %v126_v25 = vld [vmem:[#allocation5 + $0x60] sm:$0xff]  ;;  %v127_v26 = vld [vmem:[#allocation5 + $0x68] sm:$0xff]  ;;  %v151_v27 = vpack.c.bf16 %v125_v24, %v124_v23  ;;  %v128_v29 = vld [vmem:[#allocation5 + $0x70] sm:$0xff] }
  0x3c   :  { %v152_v28 = vpack.c.bf16 %v127_v26, %v126_v25  ;;  %v129_v30 = vld [vmem:[#allocation5 + $0x78] sm:$0xff]  ;;  %v130_v31 = vld [vmem:[#allocation5 + $0x80] sm:$0xff]  ;;  %v131_v32 = vld [vmem:[#allocation5 + $0x88] sm:$0xff] }
  0x3d   :  { %v153_v33 = vpack.c.bf16 %v129_v30, %v128_v29  ;;  %v154_v34 = vpack.c.bf16 %v131_v32, %v130_v31  ;;  %v132_v35 = vld [vmem:[#allocation5 + $0x90] sm:$0xff]  ;;  %v133_v36 = vld [vmem:[#allocation5 + $0x98] sm:$0xff]  ;;  %v134_v37 = vld [vmem:[#allocation5 + $0xa0] sm:$0xff] }
  0x3e   :  { %1892 = vmatpush3.bf16.msra.mxu1 %v1994_v2  ;;  %v135_v38 = vld [vmem:[#allocation5 + $0xa8] sm:$0xff]  ;;  %v155_v39 = vpack.c.bf16 %v133_v36, %v132_v35  ;;  %v136_v41 = vld [vmem:[#allocation5 + $0xb0] sm:$0xff]  ;;  %v137_v42 = vld [vmem:[#allocation5 + $0xb8] sm:$0xff] }
  0x3f   :  { %1893 = vmatprep.subr.bf16.mxu1 %v1995_v3  ;;  %v156_v40 = vpack.c.bf16 %v135_v38, %v134_v37  ;;  %v138_v43 = vld [vmem:[#allocation5 + $0xc0] sm:$0xff]  ;;  %v139_v44 = vld [vmem:[#allocation5 + $0xc8] sm:$0xff]  ;;  %v157_v45 = vpack.c.bf16 %v137_v42, %v136_v41  ;;  %v140_v47 = vld [vmem:[#allocation5 + $0xd0] sm:$0xff] }
  0x40   :  { %v158_v46 = vpack.c.bf16 %v139_v44, %v138_v43  ;;  %v141_v48 = vld [vmem:[#allocation5 + $0xd8] sm:$0xff]  ;;  %v142_v49 = vld [vmem:[#allocation5 + $0xe0] sm:$0xff]  ;;  %v143_v50 = vld [vmem:[#allocation5 + $0xe8] sm:$0xff] }
  0x41   :  { %v159_v51 = vpack.c.bf16 %v141_v48, %v140_v47  ;;  %v160_v52 = vpack.c.bf16 %v143_v50, %v142_v49  ;;  %v144_v53 = vld [vmem:[#allocation5 + $0xf0] sm:$0xff]  ;;  %v145_v54 = vld [vmem:[#allocation5 + $0xf8] sm:$0xff]  ;;  %v2263_v56 = vld [vmem:[#allocation2 + $0x4] ss:$8 sps:$4 sm:$0xff]  }
  0x42   :  { %1894 = vmatpush3.bf16.msra.mxu1 %v1995_v3  ;;  %v161_v55 = vpack.c.bf16 %v145_v54, %v144_v53  ;;  %v2048_v41 = vld [vmem:[#allocation8 + $0x38] sm:$0xff]   ;;  %v2049_v42 = vld [vmem:[#allocation8 + $0x30] sm:$0xff]   ;;  %v2275_v43 = vld [vmem:[#allocation2] ss:$8 sps:$4 sm:$0xff]  }
  0x43   :  { %1895 = vmatprep.subr.bf16.mxu1 %v1996_v7  ;;  %1935 = vmatprep.subr.bf16.mxu0 %v2048_v41  ;;  %v2050_v44 = vld [vmem:[#allocation8 + $0x28] sm:$0xff]   ;;  %v2292_v49 = vld [vmem:[#allocation2 + $0x34] ss:$8 sps:$4 sm:$0xff]   ;;  %v2296_v50 = vld [vmem:[#allocation2 + $0x30] ss:$8 sps:$4 sm:$0xff]  }
  0x44   :  { %1936 = vmatpush3.bf16.msra.mxu0 %v2048_v41  ;;  %v2286_v47 = vld [vmem:[#allocation2 + $0x24] ss:$8 sps:$4 sm:$0xff]   ;;  %v2290_v48 = vld [vmem:[#allocation2 + $0x20] ss:$8 sps:$4 sm:$0xff]   ;;  %v2304_v53 = vld [vmem:[#allocation2 + $0x54] ss:$8 sps:$4 sm:$0xff]  }
  0x45   :  { %1937 = vmatprep.subr.bf16.mxu0 %v2049_v42  ;;  %v2308_v54 = vld [vmem:[#allocation2 + $0x50] ss:$8 sps:$4 sm:$0xff]  }
  0x46   :  { %1896 = vmatpush3.bf16.msra.mxu1 %v1996_v7 }
  0x47   :  { %1897 = vmatprep.subr.bf16.mxu1 %v1997_v8 }
  0x48   :  { %1938 = vmatpush3.bf16.msra.mxu0 %v2049_v42 }
  0x49   :  { %1939 = vmatprep.subr.bf16.mxu0 %v2050_v44 }
  0x4a   :  { %1898 = vmatpush3.bf16.msra.mxu1 %v1997_v8 }
  0x4b   :  { %1899 = vmatprep.subr.bf16.mxu1 %v1998_v9 }
  0x4c   :  { %1940 = vmatpush3.bf16.msra.mxu0 %v2050_v44 }
  0x4e   :  { %1900 = vmatpush3.bf16.msra.mxu1 %v1998_v9 }
  0x4f   :  { %1901 = vmatprep.subr.bf16.mxu1 %v1999_v10 }
  0x52   :  { %1902 = vmatpush3.bf16.msra.mxu1 %v1999_v10 }
  0x55   :  { %1904 = vmatmul.mubr.bf16.vlgmr.msra.gmra.mxu1 %v147_v15 }
  0x56   :  { %1907 = vmatprep.mubr.bf16.mxu1 %v148_v16 }
  0x5d   :  { %1908 = vmatmul.mubr.bf16.gmra.mxu1 %v149_v21 }
  0x5e   :  { %1911 = vmatprep.mubr.bf16.mxu1 %v150_v22 }
  0x65   :  { %1912 = vmatmul.mubr.bf16.gmra.mxu1 %v151_v27 }
  0x66   :  { %1915 = vmatprep.mubr.bf16.mxu1 %v152_v28 }
  0x6d   :  { %1916 = vmatmul.mubr.bf16.gmra.mxu1 %v153_v33 }
  0x6e   :  { %1919 = vmatprep.mubr.bf16.mxu1 %v154_v34 }
  0x75   :  { %1920 = vmatmul.mubr.bf16.gmra.mxu1 %v155_v39 }
  0x76   :  { %1923 = vmatprep.mubr.bf16.mxu1 %v156_v40 }
  0x7d   :  { %1924 = vmatmul.mubr.bf16.gmra.mxu1 %v157_v45  ;;  %v2280_v45 = vld [vmem:[#allocation2 + $0x14] ss:$8 sps:$4 sm:$0xff]  }
  0x7e   :  { %1927 = vmatprep.mubr.bf16.mxu1 %v158_v46  ;;  %v2284_v46 = vld [vmem:[#allocation2 + $0x10] ss:$8 sps:$4 sm:$0xff]  }
  0x85   :  { %1928 = vmatmul.mubr.bf16.gmra.mxu1 %v159_v51  ;;  %v2298_v51 = vld [vmem:[#allocation2 + $0x44] ss:$8 sps:$4 sm:$0xff]  }
  0x86   :  { %1931 = vmatprep.mubr.bf16.mxu1 %v160_v52  ;;  %v2302_v52 = vld [vmem:[#allocation2 + $0x40] ss:$8 sps:$4 sm:$0xff]  }
  0x8d   :  { %1932 = vmatmul.mubr.bf16.gmra.mxu1 %v161_v55  ;;  %v2310_v55 = vld [vmem:[#allocation2 + $0x64] ss:$8 sps:$4 sm:$0xff]  }
  0x8e   :  { %602 = vmatprep.mubr.bf16.mxu1 %v2263_v56 }
 0x115   :  { %v2266_v57 = vpop.f32.mrf.mxu1 }
 0x117   :  { %v2268_v58 = vpop.f32.mrf.mxu1 }
 0x119   :  { %v1906_v59 = vpop.f32.mrf.mxu1 }
 0x11a   :  { %v388_v60 = vpack.c.bf16 %v1906_v59, %v2266_v57  ;;  %v2314_v57 = vld [vmem:[#allocation2 + $0x60] ss:$8 sps:$4 sm:$0xff]   ;;  %v2320_v59 = vld [vmem:[#allocation2 + $0x70] ss:$8 sps:$4 sm:$0xff]  }
 0x11b   :  { %v2271_v61 = vpop.f32.mrf.mxu1 }
 0x11c   :  { %v387_v62 = vpack.c.bf16 %v2271_v61, %v2268_v58  ;;  %v2316_v58 = vld [vmem:[#allocation2 + $0x74] ss:$8 sps:$4 sm:$0xff]   ;;  %v2326_v61 = vld [vmem:[#allocation2 + $0x80] ss:$8 sps:$4 sm:$0xff]  }
 0x11d   :  { %v1909_v63 = vpop.f32.mrf.mxu1 }
 0x11f   :  { %v276_v0 = vpop.f32.mrf.mxu1 }
 0x121   :  { %v1910_v1 = vpop.f32.mrf.mxu1 }
 0x122   :  { %v390_v2 = vpack.c.bf16 %v1910_v1, %v1909_v63  ;;  %v2051_v63 = vld [vmem:[#allocation8 + $0x20] sm:$0xff]  }
 0x123   :  { %v279_v3 = vpop.f32.mrf.mxu1  ;;  %1941 = vmatprep.subr.bf16.mxu0 %v2051_v63  ;;  %v2334_v1 = vld [vmem:[#allocation2 + $0xa4] ss:$8 sps:$4 sm:$0xff]  }
 0x124   :  { %v389_v4 = vpack.c.bf16 %v279_v3, %v276_v0  ;;  %v2332_v0 = vld [vmem:[#allocation2 + $0x90] ss:$8 sps:$4 sm:$0xff]   ;;  %1942 = vmatpush3.bf16.msra.mxu0 %v2051_v63 }
 0x125   :  { %v1913_v5 = vpop.f32.mrf.mxu1  ;;  %v2053_v3 = vld [vmem:[#allocation8 + $0x10] sm:$0xff]  }
 0x127   :  { %v292_v6 = vpop.f32.mrf.mxu1 }
 0x129   :  { %v1914_v7 = vpop.f32.mrf.mxu1 }
 0x12a   :  { %v392_v34 = vpack.c.bf16 %v1914_v7, %v1913_v5  ;;  %v2340_v5 = vld [vmem:[#allocation2 + $0xb4] ss:$8 sps:$4 sm:$0xff]   ;;  %v2055_v7 = vld [vmem:[#allocation8] sm:$0xff]  }
 0x12b   :  { %v295_v8 = vpop.f32.mrf.mxu1 }
 0x12c   :  { %v391_v36 = vpack.c.bf16 %v295_v8, %v292_v6  ;;  %v2054_v6 = vld [vmem:[#allocation8 + $0x8] sm:$0xff]   ;;  %v2344_v8 = vld [vmem:[#allocation2 + $0xb0] ss:$8 sps:$4 sm:$0xff]  }
 0x12d   :  { %v1917_v9 = vpop.f32.mrf.mxu1 }
 0x12f   :  { %v308_v10 = vpop.f32.mrf.mxu1 }
 0x131   :  { %v1918_v11 = vpop.f32.mrf.mxu1 }
 0x132   :  { %v394_v29 = vpack.c.bf16 %v1918_v11, %v1917_v9  ;;  %v2346_v9 = vld [vmem:[#allocation2 + $0xc4] ss:$8 sps:$4 sm:$0xff]   ;;  %v2352_v11 = vld [vmem:[#allocation2 + $0xd4] ss:$8 sps:$4 sm:$0xff]  }
 0x133   :  { %v311_v12 = vpop.f32.mrf.mxu1 }
 0x134   :  { %v393_v32 = vpack.c.bf16 %v311_v12, %v308_v10  ;;  %v2350_v10 = vld [vmem:[#allocation2 + $0xc0] ss:$8 sps:$4 sm:$0xff]   ;;  %v2356_v12 = vld [vmem:[#allocation2 + $0xd0] ss:$8 sps:$4 sm:$0xff]  }
 0x135   :  { %v1921_v13 = vpop.f32.mrf.mxu1  ;;  %2624 = vst [vmem:[#allocation15_spill] sm:$0xff] %v2356_v12 }
 0x137   :  { %v324_v14 = vpop.f32.mrf.mxu1 }
 0x139   :  { %v1922_v15 = vpop.f32.mrf.mxu1 }
 0x13a   :  { %v396_v39 = vpack.c.bf16 %v1922_v15, %v1921_v13  ;;  %v2358_v13 = vld [vmem:[#allocation2 + $0xe4] ss:$8 sps:$4 sm:$0xff]   ;;  %v2364_v15 = vld [vmem:[#allocation2 + $0xf4] ss:$8 sps:$4 sm:$0xff]  }
 0x13b   :  { %v327_v16 = vpop.f32.mrf.mxu1  ;;  %2625 = vst [vmem:[#allocation16_spill] sm:$0xff] %v2358_v13  ;;  %2627 = vst [vmem:[#allocation18_spill] sm:$0xff] %v2364_v15 }
 0x13c   :  { %v395_v40 = vpack.c.bf16 %v327_v16, %v324_v14  ;;  %v2362_v14 = vld [vmem:[#allocation2 + $0xe0] ss:$8 sps:$4 sm:$0xff]   ;;  %v2368_v16 = vld [vmem:[#allocation2 + $0xf0] ss:$8 sps:$4 sm:$0xff]  }
 0x13d   :  { %v1925_v17 = vpop.f32.mrf.mxu1  ;;  %2626 = vst [vmem:[#allocation17_spill] sm:$0xff] %v2362_v14  ;;  %2628 = vst [vmem:[#allocation19_spill] sm:$0xff] %v2368_v16 }
 0x13f   :  { %v340_v18 = vpop.f32.mrf.mxu1 }
 0x141   :  { %v1926_v19 = vpop.f32.mrf.mxu1 }
 0x142   :  { %v398_v37 = vpack.c.bf16 %v1926_v19, %v1925_v17 }
 0x143   :  { %v343_v20 = vpop.f32.mrf.mxu1 }
 0x144   :  { %v397_v38 = vpack.c.bf16 %v343_v20, %v340_v18 }
 0x145   :  { %v1929_v21 = vpop.f32.mrf.mxu1 }
 0x147   :  { %v356_v22 = vpop.f32.mrf.mxu1 }
 0x149   :  { %v1930_v23 = vpop.f32.mrf.mxu1 }
 0x14a   :  { %v400_v33 = vpack.c.bf16 %v1930_v23, %v1929_v21  ;;  %v2374_v21 = vld [vmem:[%s2614_s3] ss:$0 sm:$0xff] }
 0x14b   :  { %v359_v24 = vpop.f32.mrf.mxu1 }
 0x14c   :  { %v399_v35 = vpack.c.bf16 %v359_v24, %v356_v22 }
 0x14d   :  { %v1933_v25 = vpop.f32.mrf.mxu1 }
 0x14f   :  { %v372_v26 = vpop.f32.mrf.mxu1 }
 0x151   :  { %v1934_v27 = vpop.f32.mrf.mxu1 }
 0x152   :  { %v402_v28 = vpack.c.bf16 %v1934_v27, %v1933_v25 }
 0x153   :  { %v375_v30 = vpop.f32.mrf.mxu1 }
 0x154   :  { %v401_v31 = vpack.c.bf16 %v375_v30, %v372_v26  ;;  %1639 = vmatprep.subr.bf16.mxu1 %v402_v28 }
 0x155   :  { %1640 = vmatpush3.bf16.msra.mxu1 %v394_v29 }
 0x156   :  { %1641 = vmatprep.subr.bf16.mxu1 %v401_v31 }
 0x159   :  { %1642 = vmatpush3.bf16.msra.mxu1 %v393_v32 }
 0x15a   :  { %1643 = vmatprep.subr.bf16.mxu1 %v400_v33 }
 0x15d   :  { %1644 = vmatpush3.bf16.msra.mxu1 %v392_v34 }
 0x15e   :  { %1645 = vmatprep.subr.bf16.mxu1 %v399_v35 }
 0x161   :  { %1646 = vmatpush3.bf16.msra.mxu1 %v391_v36 }
 0x162   :  { %1647 = vmatprep.subr.bf16.mxu1 %v398_v37 }
 0x165   :  { %1648 = vmatpush3.bf16.msra.mxu1 %v390_v2  ;;  %v2052_v2 = vld [vmem:[#allocation8 + $0x18] sm:$0xff]  }
 0x166   :  { %1649 = vmatprep.subr.bf16.mxu1 %v397_v38  ;;  %1943 = vmatprep.subr.bf16.mxu0 %v2052_v2 }
 0x167   :  { %1944 = vmatpush3.bf16.msra.mxu0 %v2052_v2 }
 0x168   :  { %1945 = vmatprep.subr.bf16.mxu0 %v2053_v3 }
 0x169   :  { %1650 = vmatpush3.bf16.msra.mxu1 %v389_v4  ;;  %v2338_v4 = vld [vmem:[#allocation2 + $0xa0] ss:$8 sps:$4 sm:$0xff]  }
 0x16a   :  { %1651 = vmatprep.subr.bf16.mxu1 %v396_v39 }
 0x16b   :  { %1946 = vmatpush3.bf16.msra.mxu0 %v2053_v3 }
 0x16c   :  { %1947 = vmatprep.subr.bf16.mxu0 %v2054_v6 }
 0x16d   :  { %1652 = vmatpush3.bf16.msra.mxu1 %v388_v60  ;;  %v2322_v60 = vld [vmem:[#allocation2 + $0x84] ss:$8 sps:$4 sm:$0xff]  }
 0x16e   :  { %1653 = vmatprep.subr.bf16.mxu1 %v395_v40 }
 0x16f   :  { %1948 = vmatpush3.bf16.msra.mxu0 %v2054_v6 }
 0x170   :  { %1949 = vmatprep.subr.bf16.mxu0 %v2055_v7 }
 0x171   :  { %1654 = vmatpush3.bf16.msra.mxu1 %v387_v62  ;;  %v2328_v62 = vld [vmem:[#allocation2 + $0x94] ss:$8 sps:$4 sm:$0xff]  }
 0x173   :  { %1950 = vmatpush3.bf16.msra.mxu0 %v2055_v7 }
 0x174   :  { %603 = vmatmul.mubr.bf16.vlgmr.msra.gmra.mxu1 %v2275_v43 }
 0x175   :  { %610 = vmatprep.mubr.bf16.mxu1 %v2280_v45 }
 0x17c   :  { %611 = vmatmul.mubr.bf16.gmra.mxu1 %v2284_v46 }
 0x17d   :  { %618 = vmatprep.mubr.bf16.mxu1 %v2286_v47 }
 0x184   :  { %619 = vmatmul.mubr.bf16.gmra.mxu1 %v2290_v48 }
 0x185   :  { %626 = vmatprep.mubr.bf16.mxu1 %v2292_v49 }
 0x18c   :  { %627 = vmatmul.mubr.bf16.gmra.mxu1 %v2296_v50 }
 0x18d   :  { %634 = vmatprep.mubr.bf16.mxu1 %v2298_v51 }
 0x194   :  { %635 = vmatmul.mubr.bf16.gmra.mxu1 %v2302_v52 }
 0x195   :  { %642 = vmatprep.mubr.bf16.mxu1 %v2304_v53 }
 0x19c   :  { %643 = vmatmul.mubr.bf16.gmra.mxu1 %v2308_v54 }
 0x19d   :  { %650 = vmatprep.mubr.bf16.mxu1 %v2310_v55 }
 0x1a4   :  { %651 = vmatmul.mubr.bf16.gmra.mxu1 %v2314_v57 }
 0x1a5   :  { %658 = vmatprep.mubr.bf16.mxu1 %v2316_v58 }
 0x1ac   :  { %659 = vmatmul.mubr.bf16.gmra.mxu1 %v2320_v59 }
 0x1ad   :  { %666 = vmatprep.mubr.bf16.mxu1 %v2322_v60 }
 0x1b4   :  { %667 = vmatmul.mubr.bf16.gmra.mxu1 %v2326_v61 }
 0x1b5   :  { %674 = vmatprep.mubr.bf16.mxu1 %v2328_v62 }
 0x1bc   :  { %675 = vmatmul.mubr.bf16.gmra.mxu1 %v2332_v0 }
 0x1bd   :  { %682 = vmatprep.mubr.bf16.mxu1 %v2334_v1 }
 0x1c4   :  { %683 = vmatmul.mubr.bf16.gmra.mxu1 %v2338_v4 }
 0x1c5   :  { %690 = vmatprep.mubr.bf16.mxu1 %v2340_v5 }
 0x1cc   :  { %691 = vmatmul.mubr.bf16.gmra.mxu1 %v2344_v8 }
 0x1cd   :  { %698 = vmatprep.mubr.bf16.mxu1 %v2346_v9 }
 0x1d4   :  { %699 = vmatmul.mubr.bf16.gmra.mxu1 %v2350_v10 }
 0x1d5   :  { %706 = vmatprep.mubr.bf16.mxu1 %v2352_v11 }
 0x1dc   :  { %707 = vmatmul.mubr.bf16.gmra.mxu1 %v2356_v12 }
 0x1dd   :  { %714 = vmatprep.mubr.bf16.mxu1 %v2358_v13 }
 0x1e4   :  { %715 = vmatmul.mubr.bf16.gmra.mxu1 %v2362_v14 }
 0x1e5   :  { %722 = vmatprep.mubr.bf16.mxu1 %v2364_v15 }
 0x1ec   :  { %723 = vmatmul.mubr.bf16.gmra.mxu1 %v2368_v16 }
 0x234   :  { %v1655_v17 = vpop.f32.mrf.mxu1 }
 0x236   :  { %v1656_v18 = vpop.f32.mrf.mxu1 }
 0x237   :  { %v1657_v19 = vadd.f32 %v1656_v18, %v1655_v17 }
 0x238   :  { %v1658_v20 = vpop.f32.mrf.mxu1 }
 0x239   :  { %v605_v24 = vadd.f32 %v1657_v19, %v2374_v21 }
 0x23a   :  { %v1659_v22 = vpop.f32.mrf.mxu1 }
 0x23b   :  { %v1660_v23 = vadd.f32 %v1659_v22, %v1658_v20  ;;  %v731_v29 = vmax.f32 %v605_v24, 0.0 }
 0x23c   :  { %v1661_v25 = vpop.f32.mrf.mxu1 }
 0x23d   :  { %v608_v26 = vadd.f32 %v1660_v23, %v2374_v21 }
 0x23e   :  { %v1662_v27 = vpop.f32.mrf.mxu1 }
 0x23f   :  { %v1663_v28 = vadd.f32 %v1662_v27, %v1661_v25  ;;  %v732_v30 = vmax.f32 %v608_v26, 0.0 }
 0x240   :  { %v1664_v31 = vpop.f32.mrf.mxu1 }
 0x241   :  { %v763_v32 = vpack.c.bf16 %v732_v30, %v731_v29  ;;  %v613_v34 = vadd.f32 %v1663_v28, %v2374_v21 }
 0x242   :  { %v1665_v33 = vpop.f32.mrf.mxu1 }
 0x243   :  { %v1666_v35 = vadd.f32 %v1665_v33, %v1664_v31  ;;  %1951 = vmatprep.mubr.bf16.mxu0 %v763_v32  ;;  %v733_v39 = vmax.f32 %v613_v34, 0.0 }
 0x244   :  { %v1667_v36 = vpop.f32.mrf.mxu1 }
 0x245   :  { %v616_v37 = vadd.f32 %v1666_v35, %v2374_v21 }
 0x246   :  { %v1668_v38 = vpop.f32.mrf.mxu1 }
 0x247   :  { %v734_v40 = vmax.f32 %v616_v37, 0.0  ;;  %v1669_v41 = vadd.f32 %v1668_v38, %v1667_v36 }
 0x248   :  { %v1670_v42 = vpop.f32.mrf.mxu1 }
 0x249   :  { %v764_v44 = vpack.c.bf16 %v734_v40, %v733_v39  ;;  %v621_v2 = vadd.f32 %v1669_v41, %v2374_v21 }
 0x24a   :  { %v1671_v63 = vpop.f32.mrf.mxu1 }
 0x24b   :  { %v1672_v3 = vadd.f32 %v1671_v63, %v1670_v42  ;;  %1952 = vmatmul.mubr.bf16.vlgmr.msra.gmra.mxu0 %v764_v44  ;;  %v735_v18 = vmax.f32 %v621_v2, 0.0 }
 0x24c   :  { %v1673_v6 = vpop.f32.mrf.mxu1 }
 0x24d   :  { %v624_v7 = vadd.f32 %v1672_v3, %v2374_v21 }
 0x24e   :  { %v1674_v17 = vpop.f32.mrf.mxu1 }
 0x24f   :  { %v736_v19 = vmax.f32 %v624_v7, 0.0  ;;  %v1675_v20 = vadd.f32 %v1674_v17, %v1673_v6 }
 0x250   :  { %v1676_v22 = vpop.f32.mrf.mxu1 }
 0x251   :  { %v765_v23 = vpack.c.bf16 %v736_v19, %v735_v18  ;;  %v629_v25 = vadd.f32 %v1675_v20, %v2374_v21 }
 0x252   :  { %v1677_v24 = vpop.f32.mrf.mxu1 }
 0x253   :  { %v1678_v26 = vadd.f32 %v1677_v24, %v1676_v22  ;;  %1955 = vmatprep.mubr.bf16.mxu0 %v765_v23  ;;  %v737_v30 = vmax.f32 %v629_v25, 0.0 }
 0x254   :  { %v1679_v27 = vpop.f32.mrf.mxu1 }
 0x255   :  { %v632_v28 = vadd.f32 %v1678_v26, %v2374_v21 }
 0x256   :  { %v1680_v29 = vpop.f32.mrf.mxu1 }
 0x257   :  { %v738_v31 = vmax.f32 %v632_v28, 0.0  ;;  %v1681_v32 = vadd.f32 %v1680_v29, %v1679_v27 }
 0x258   :  { %v1682_v33 = vpop.f32.mrf.mxu1 }
 0x259   :  { %v766_v34 = vpack.c.bf16 %v738_v31, %v737_v30  ;;  %v637_v36 = vadd.f32 %v1681_v32, %v2374_v21 }
 0x25a   :  { %v1683_v35 = vpop.f32.mrf.mxu1 }
 0x25b   :  { %v1684_v37 = vadd.f32 %v1683_v35, %v1682_v33  ;;  %1956 = vmatmul.mubr.bf16.gmra.mxu0 %v766_v34  ;;  %v739_v41 = vmax.f32 %v637_v36, 0.0 }
 0x25c   :  { %v1685_v38 = vpop.f32.mrf.mxu1 }
 0x25d   :  { %v640_v39 = vadd.f32 %v1684_v37, %v2374_v21 }
 0x25e   :  { %v1686_v40 = vpop.f32.mrf.mxu1 }
 0x25f   :  { %v740_v42 = vmax.f32 %v640_v39, 0.0  ;;  %v1687_v44 = vadd.f32 %v1686_v40, %v1685_v38 }
 0x260   :  { %v1688_v63 = vpop.f32.mrf.mxu1 }
 0x261   :  { %v767_v2 = vpack.c.bf16 %v740_v42, %v739_v41  ;;  %v645_v6 = vadd.f32 %v1687_v44, %v2374_v21 }
 0x262   :  { %v1689_v3 = vpop.f32.mrf.mxu1 }
 0x263   :  { %v1690_v7 = vadd.f32 %v1689_v3, %v1688_v63  ;;  %1959 = vmatprep.mubr.bf16.mxu0 %v767_v2  ;;  %v741_v20 = vmax.f32 %v645_v6, 0.0 }
 0x264   :  { %v1691_v17 = vpop.f32.mrf.mxu1 }
 0x265   :  { %v648_v18 = vadd.f32 %v1690_v7, %v2374_v21 }
 0x266   :  { %v1692_v19 = vpop.f32.mrf.mxu1 }
 0x267   :  { %v742_v22 = vmax.f32 %v648_v18, 0.0  ;;  %v1693_v23 = vadd.f32 %v1692_v19, %v1691_v17 }
 0x268   :  { %v1694_v24 = vpop.f32.mrf.mxu1 }
 0x269   :  { %v768_v25 = vpack.c.bf16 %v742_v22, %v741_v20  ;;  %v653_v27 = vadd.f32 %v1693_v23, %v2374_v21 }
 0x26a   :  { %v1695_v26 = vpop.f32.mrf.mxu1 }
 0x26b   :  { %v1696_v28 = vadd.f32 %v1695_v26, %v1694_v24  ;;  %1960 = vmatmul.mubr.bf16.gmra.mxu0 %v768_v25  ;;  %v743_v32 = vmax.f32 %v653_v27, 0.0 }
 0x26c   :  { %v1697_v29 = vpop.f32.mrf.mxu1 }
 0x26d   :  { %v656_v30 = vadd.f32 %v1696_v28, %v2374_v21 }
 0x26e   :  { %v1698_v31 = vpop.f32.mrf.mxu1 }
 0x26f   :  { %v744_v33 = vmax.f32 %v656_v30, 0.0  ;;  %v1699_v34 = vadd.f32 %v1698_v31, %v1697_v29 }
 0x270   :  { %v1700_v35 = vpop.f32.mrf.mxu1 }
 0x271   :  { %v769_v36 = vpack.c.bf16 %v744_v33, %v743_v32  ;;  %v661_v38 = vadd.f32 %v1699_v34, %v2374_v21 }
 0x272   :  { %v1701_v37 = vpop.f32.mrf.mxu1 }
 0x273   :  { %v1702_v39 = vadd.f32 %v1701_v37, %v1700_v35  ;;  %1963 = vmatprep.mubr.bf16.mxu0 %v769_v36  ;;  %v745_v44 = vmax.f32 %v661_v38, 0.0 }
 0x274   :  { %v1703_v40 = vpop.f32.mrf.mxu1 }
 0x275   :  { %v664_v41 = vadd.f32 %v1702_v39, %v2374_v21 }
 0x276   :  { %v1704_v42 = vpop.f32.mrf.mxu1 }
 0x277   :  { %v746_v63 = vmax.f32 %v664_v41, 0.0  ;;  %v1705_v2 = vadd.f32 %v1704_v42, %v1703_v40 }
 0x278   :  { %v1706_v3 = vpop.f32.mrf.mxu1 }
 0x279   :  { %v770_v6 = vpack.c.bf16 %v746_v63, %v745_v44  ;;  %v669_v17 = vadd.f32 %v1705_v2, %v2374_v21 }
 0x27a   :  { %v1707_v7 = vpop.f32.mrf.mxu1 }
 0x27b   :  { %v1708_v18 = vadd.f32 %v1707_v7, %v1706_v3  ;;  %1964 = vmatmul.mubr.bf16.gmra.mxu0 %v770_v6  ;;  %v747_v23 = vmax.f32 %v669_v17, 0.0 }
 0x27c   :  { %v1709_v19 = vpop.f32.mrf.mxu1 }
 0x27d   :  { %v672_v20 = vadd.f32 %v1708_v18, %v2374_v21 }
 0x27e   :  { %v1710_v22 = vpop.f32.mrf.mxu1 }
 0x27f   :  { %v748_v24 = vmax.f32 %v672_v20, 0.0  ;;  %v1711_v25 = vadd.f32 %v1710_v22, %v1709_v19 }
 0x280   :  { %v1712_v26 = vpop.f32.mrf.mxu1 }
 0x281   :  { %v771_v27 = vpack.c.bf16 %v748_v24, %v747_v23  ;;  %v677_v29 = vadd.f32 %v1711_v25, %v2374_v21 }
 0x282   :  { %v1713_v28 = vpop.f32.mrf.mxu1 }
 0x283   :  { %v1714_v30 = vadd.f32 %v1713_v28, %v1712_v26  ;;  %1967 = vmatprep.mubr.bf16.mxu0 %v771_v27  ;;  %v749_v34 = vmax.f32 %v677_v29, 0.0 }
 0x284   :  { %v1715_v31 = vpop.f32.mrf.mxu1 }
 0x285   :  { %v680_v32 = vadd.f32 %v1714_v30, %v2374_v21 }
 0x286   :  { %v1716_v33 = vpop.f32.mrf.mxu1 }
 0x287   :  { %v750_v35 = vmax.f32 %v680_v32, 0.0  ;;  %v1717_v36 = vadd.f32 %v1716_v33, %v1715_v31 }
 0x288   :  { %v1718_v37 = vpop.f32.mrf.mxu1 }
 0x289   :  { %v772_v38 = vpack.c.bf16 %v750_v35, %v749_v34  ;;  %v685_v40 = vadd.f32 %v1717_v36, %v2374_v21 }
 0x28a   :  { %v1719_v39 = vpop.f32.mrf.mxu1 }
 0x28b   :  { %v1720_v41 = vadd.f32 %v1719_v39, %v1718_v37  ;;  %1968 = vmatmul.mubr.bf16.gmra.mxu0 %v772_v38  ;;  %v751_v2 = vmax.f32 %v685_v40, 0.0 }
 0x28c   :  { %v1721_v42 = vpop.f32.mrf.mxu1 }
 0x28d   :  { %v688_v44 = vadd.f32 %v1720_v41, %v2374_v21 }
 0x28e   :  { %v1722_v63 = vpop.f32.mrf.mxu1 }
 0x28f   :  { %v752_v3 = vmax.f32 %v688_v44, 0.0  ;;  %v1723_v6 = vadd.f32 %v1722_v63, %v1721_v42 }
 0x290   :  { %v1724_v7 = vpop.f32.mrf.mxu1 }
 0x291   :  { %v773_v17 = vpack.c.bf16 %v752_v3, %v751_v2  ;;  %v693_v19 = vadd.f32 %v1723_v6, %v2374_v21 }
 0x292   :  { %v1725_v18 = vpop.f32.mrf.mxu1 }
 0x293   :  { %v1726_v20 = vadd.f32 %v1725_v18, %v1724_v7  ;;  %1971 = vmatprep.mubr.bf16.mxu0 %v773_v17  ;;  %v753_v25 = vmax.f32 %v693_v19, 0.0 }
 0x294   :  { %v1727_v22 = vpop.f32.mrf.mxu1 }
 0x295   :  { %v696_v23 = vadd.f32 %v1726_v20, %v2374_v21 }
 0x296   :  { %v1728_v24 = vpop.f32.mrf.mxu1 }
 0x297   :  { %v754_v26 = vmax.f32 %v696_v23, 0.0  ;;  %v1729_v27 = vadd.f32 %v1728_v24, %v1727_v22 }
 0x298   :  { %v1730_v28 = vpop.f32.mrf.mxu1 }
 0x299   :  { %v774_v29 = vpack.c.bf16 %v754_v26, %v753_v25  ;;  %v701_v31 = vadd.f32 %v1729_v27, %v2374_v21 }
 0x29a   :  { %v1731_v30 = vpop.f32.mrf.mxu1 }
 0x29b   :  { %v1732_v32 = vadd.f32 %v1731_v30, %v1730_v28  ;;  %1972 = vmatmul.mubr.bf16.gmra.mxu0 %v774_v29  ;;  %v755_v36 = vmax.f32 %v701_v31, 0.0 }
 0x29c   :  { %v1733_v33 = vpop.f32.mrf.mxu1 }
 0x29d   :  { %v704_v34 = vadd.f32 %v1732_v32, %v2374_v21 }
 0x29e   :  { %v1734_v35 = vpop.f32.mrf.mxu1 }
 0x29f   :  { %v756_v37 = vmax.f32 %v704_v34, 0.0  ;;  %v1735_v38 = vadd.f32 %v1734_v35, %v1733_v33 }
 0x2a0   :  { %v1736_v39 = vpop.f32.mrf.mxu1 }
 0x2a1   :  { %v775_v40 = vpack.c.bf16 %v756_v37, %v755_v36  ;;  %v709_v42 = vadd.f32 %v1735_v38, %v2374_v21 }
 0x2a2   :  { %v1737_v41 = vpop.f32.mrf.mxu1 }
 0x2a3   :  { %v1738_v44 = vadd.f32 %v1737_v41, %v1736_v39  ;;  %1975 = vmatprep.mubr.bf16.mxu0 %v775_v40  ;;  %v757_v6 = vmax.f32 %v709_v42, 0.0 }
 0x2a4   :  { %v1739_v63 = vpop.f32.mrf.mxu1 }
 0x2a5   :  { %v712_v2 = vadd.f32 %v1738_v44, %v2374_v21 }
 0x2a6   :  { %v1740_v3 = vpop.f32.mrf.mxu1 }
 0x2a7   :  { %v758_v7 = vmax.f32 %v712_v2, 0.0  ;;  %v1741_v17 = vadd.f32 %v1740_v3, %v1739_v63 }
 0x2a8   :  { %v1742_v18 = vpop.f32.mrf.mxu1 }
 0x2a9   :  { %v776_v19 = vpack.c.bf16 %v758_v7, %v757_v6  ;;  %v717_v22 = vadd.f32 %v1741_v17, %v2374_v21 }
 0x2aa   :  { %v1743_v20 = vpop.f32.mrf.mxu1 }
 0x2ab   :  { %v1744_v23 = vadd.f32 %v1743_v20, %v1742_v18  ;;  %1976 = vmatmul.mubr.bf16.gmra.mxu0 %v776_v19  ;;  %v759_v27 = vmax.f32 %v717_v22, 0.0 }
 0x2ac   :  { %v1745_v24 = vpop.f32.mrf.mxu1 }
 0x2ad   :  { %v720_v25 = vadd.f32 %v1744_v23, %v2374_v21 }
 0x2ae   :  { %v1746_v26 = vpop.f32.mrf.mxu1 }
 0x2af   :  { %v760_v28 = vmax.f32 %v720_v25, 0.0  ;;  %v1747_v29 = vadd.f32 %v1746_v26, %v1745_v24 }
 0x2b0   :  { %v1748_v30 = vpop.f32.mrf.mxu1 }
 0x2b1   :  { %v777_v31 = vpack.c.bf16 %v760_v28, %v759_v27  ;;  %v725_v33 = vadd.f32 %v1747_v29, %v2374_v21 }
 0x2b2   :  { %v1749_v32 = vpop.f32.mrf.mxu1 }
 0x2b3   :  { %v1750_v34 = vadd.f32 %v1749_v32, %v1748_v30  ;;  %1979 = vmatprep.mubr.bf16.mxu0 %v777_v31  ;;  %v761_v36 = vmax.f32 %v725_v33, 0.0 }
 0x2b5   :  { %v728_v35 = vadd.f32 %v1750_v34, %v2374_v21 }
 0x2b7   :  { %v762_v37 = vmax.f32 %v728_v35, 0.0 }
 0x2b9   :  { %v778_v38 = vpack.c.bf16 %v762_v37, %v761_v36 }
 0x2bb   :  { %1980 = vmatmul.mubr.bf16.gmra.mxu0 %v778_v38 }
 0x2bc   :  { %1059 = vmatprep.mubr.bf16.mxu0 %v2263_v56 }
 0x30b   :  { %v1953_v39 = vpop.f32.mrf.mxu0 }
 0x30d   :  { %v877_v40 = vpop.f32.mrf.mxu0 }
 0x30f   :  { %v1954_v41 = vpop.f32.mrf.mxu0 }
 0x310   :  { %v1005_v42 = vpack.c.bf16 %v1954_v41, %v1953_v39 }
 0x311   :  { %v880_v44 = vpop.f32.mrf.mxu0 }
 0x312   :  { %v1004_v63 = vpack.c.bf16 %v880_v44, %v877_v40 }
 0x31b   :  { %v1957_v2 = vpop.f32.mrf.mxu0 }
 0x31d   :  { %v893_v3 = vpop.f32.mrf.mxu0 }
 0x31f   :  { %v1958_v6 = vpop.f32.mrf.mxu0 }
 0x320   :  { %v1007_v7 = vpack.c.bf16 %v1958_v6, %v1957_v2 }
 0x321   :  { %v896_v17 = vpop.f32.mrf.mxu0 }
 0x322   :  { %v1006_v18 = vpack.c.bf16 %v896_v17, %v893_v3 }
 0x32b   :  { %v1961_v19 = vpop.f32.mrf.mxu0 }
 0x32d   :  { %v909_v21 = vpop.f32.mrf.mxu0 }
 0x32f   :  { %v1962_v20 = vpop.f32.mrf.mxu0 }
 0x330   :  { %v1009_v16 = vpack.c.bf16 %v1962_v20, %v1961_v19 }
 0x331   :  { %v912_v22 = vpop.f32.mrf.mxu0 }
 0x332   :  { %v1008_v14 = vpack.c.bf16 %v912_v22, %v909_v21 }
 0x33b   :  { %v1965_v23 = vpop.f32.mrf.mxu0 }
 0x33d   :  { %v925_v24 = vpop.f32.mrf.mxu0 }
 0x33f   :  { %v1966_v25 = vpop.f32.mrf.mxu0 }
 0x340   :  { %v1011_v44 = vpack.c.bf16 %v1966_v25, %v1965_v23 }
 0x341   :  { %v928_v56 = vpop.f32.mrf.mxu0 }
 0x342   :  { %v1010_v6 = vpack.c.bf16 %v928_v56, %v925_v24 }
 0x34b   :  { %v1969_v26 = vpop.f32.mrf.mxu0 }
 0x34d   :  { %v941_v27 = vpop.f32.mrf.mxu0 }
 0x34f   :  { %v1970_v28 = vpop.f32.mrf.mxu0 }
 0x350   :  { %v1013_v23 = vpack.c.bf16 %v1970_v28, %v1969_v26  ;;  %v2060_v26 = vld [vmem:[#allocation5 + $0x20] sm:$0xff] }
 0x351   :  { %v944_v29 = vpop.f32.mrf.mxu0 }
 0x352   :  { %v1012_v25 = vpack.c.bf16 %v944_v29, %v941_v27 }
 0x35b   :  { %v1973_v30 = vpop.f32.mrf.mxu0 }
 0x35d   :  { %v957_v31 = vpop.f32.mrf.mxu0 }
 0x35f   :  { %v1974_v32 = vpop.f32.mrf.mxu0 }
 0x360   :  { %v1015_v13 = vpack.c.bf16 %v1974_v32, %v1973_v30 }
 0x361   :  { %v960_v33 = vpop.f32.mrf.mxu0 }
 0x362   :  { %v1014_v12 = vpack.c.bf16 %v960_v33, %v957_v31  ;;  %v2061_v33 = vld [vmem:[#allocation5 + $0x28] sm:$0xff] }
 0x36b   :  { %v1977_v34 = vpop.f32.mrf.mxu0 }
 0x36d   :  { %v973_v35 = vpop.f32.mrf.mxu0 }
 0x36f   :  { %v1978_v36 = vpop.f32.mrf.mxu0 }
 0x370   :  { %v1017_v17 = vpack.c.bf16 %v1978_v36, %v1977_v34 }
 0x371   :  { %v976_v37 = vpop.f32.mrf.mxu0 }
 0x372   :  { %v1016_v15 = vpack.c.bf16 %v976_v37, %v973_v35 }
 0x37b   :  { %v1981_v38 = vpop.f32.mrf.mxu0 }
 0x37d   :  { %v989_v39 = vpop.f32.mrf.mxu0 }
 0x37f   :  { %v1982_v40 = vpop.f32.mrf.mxu0 }
 0x380   :  { %v1019_v41 = vpack.c.bf16 %v1982_v40, %v1981_v38  ;;  %v2062_v40 = vld [vmem:[#allocation5 + $0x30] sm:$0xff] }
 0x381   :  { %v992_v2 = vpop.f32.mrf.mxu0 }
 0x382   :  { %v1018_v3 = vpack.c.bf16 %v992_v2, %v989_v39  ;;  %1775 = vmatprep.subr.bf16.mxu0 %v1019_v41 }
 0x383   :  { %1776 = vmatpush3.bf16.msra.mxu0 %v1011_v44 }
 0x384   :  { %1777 = vmatprep.subr.bf16.mxu0 %v1018_v3 }
 0x387   :  { %1778 = vmatpush3.bf16.msra.mxu0 %v1010_v6 }
 0x388   :  { %1779 = vmatprep.subr.bf16.mxu0 %v1017_v17 }
 0x38b   :  { %1780 = vmatpush3.bf16.msra.mxu0 %v1009_v16 }
 0x38c   :  { %1781 = vmatprep.subr.bf16.mxu0 %v1016_v15 }
 0x38f   :  { %1782 = vmatpush3.bf16.msra.mxu0 %v1008_v14 }
 0x390   :  { %1783 = vmatprep.subr.bf16.mxu0 %v1015_v13  ;;  %v2058_v13 = vld [vmem:[#allocation5 + $0x10] sm:$0xff] }
 0x393   :  { %1784 = vmatpush3.bf16.msra.mxu0 %v1007_v7 }
 0x394   :  { %1785 = vmatprep.subr.bf16.mxu0 %v1014_v12 }
 0x397   :  { %1786 = vmatpush3.bf16.msra.mxu0 %v1006_v18  ;;  %v2059_v18 = vld [vmem:[#allocation5 + $0x18] sm:$0xff] }
 0x398   :  { %1787 = vmatprep.subr.bf16.mxu0 %v1013_v23  ;;  %v2063_v23 = vld [vmem:[#allocation5 + $0x38] sm:$0xff] }
 0x39b   :  { %1788 = vmatpush3.bf16.msra.mxu0 %v1005_v42 }
 0x39c   :  { %1789 = vmatprep.subr.bf16.mxu0 %v1012_v25 }
 0x39f   :  { %1790 = vmatpush3.bf16.msra.mxu0 %v1004_v63 }
 0x3a2   :  { %1060 = vmatmul.mubr.bf16.vlgmr.msra.gmra.mxu0 %v2275_v43  ;;  %v2629_v43 = vld [vmem:[#allocation15_spill] sm:$0xff] }
 0x3a3   :  { %1067 = vmatprep.mubr.bf16.mxu0 %v2280_v45  ;;  %v2630_v45 = vld [vmem:[#allocation16_spill] sm:$0xff] }
 0x3aa   :  { %1068 = vmatmul.mubr.bf16.gmra.mxu0 %v2284_v46  ;;  %v2631_v46 = vld [vmem:[#allocation17_spill] sm:$0xff] }
 0x3ab   :  { %1075 = vmatprep.mubr.bf16.mxu0 %v2286_v47  ;;  %v2632_v47 = vld [vmem:[#allocation18_spill] sm:$0xff] }
 0x3b2   :  { %1076 = vmatmul.mubr.bf16.gmra.mxu0 %v2290_v48  ;;  %v2633_v48 = vld [vmem:[#allocation19_spill] sm:$0xff] }
 0x3b3   :  { %1083 = vmatprep.mubr.bf16.mxu0 %v2292_v49 }
 0x3ba   :  { %1084 = vmatmul.mubr.bf16.gmra.mxu0 %v2296_v50 }
 0x3bb   :  { %1091 = vmatprep.mubr.bf16.mxu0 %v2298_v51  ;;  %v2443_v51 = vld [vmem:[%s2616_s5] ss:$0 sm:$0xff]  ;;  %s2204_s5 = smov [#allocation10]  }
 0x3bc   :  { %s1547_s24 = sshll.u32 %s2204_s5, 4  ;;  %s1548_s24 = int_to_ptr.vmem [resolvable:$true] %s1547_s24 }
 0x3bd   :  { %s2168_s25 = scalar_lea.vmem %s1548_s24, 4096  ;;  %p2173_p7 = scmp.lt.s32.totalorder %s1548_s24, %s1548_s24 }
 0x3be   :  { %p2169_p6 = scmp.ne.s32.totalorder %s1548_s24, %s2168_s25  ;;  %p2174_p8 = scmp.lt.s32.totalorder %s2168_s25, %s2168_s25 }
 0x3c0   :  { %p2175_p9 = por %p2174_p8, %p2173_p7 }
 0x3c2   :  { %1092 = vmatmul.mubr.bf16.gmra.mxu0 %v2302_v52  ;;  %p2176_p10 = pnand %p2175_p9, %p2169_p6 }
 0x3c3   :  { %1099 = vmatprep.mubr.bf16.mxu0 %v2304_v53 }
 0x3ca   :  { %1100 = vmatmul.mubr.bf16.gmra.mxu0 %v2308_v54 }
 0x3cb   :  { %1107 = vmatprep.mubr.bf16.mxu0 %v2310_v55 }
 0x3d2   :  { %1108 = vmatmul.mubr.bf16.gmra.mxu0 %v2314_v57 }
 0x3d3   :  { %1115 = vmatprep.mubr.bf16.mxu0 %v2316_v58  ;;  %v2056_v58 = vld [vmem:[#allocation5] sm:$0xff] }
 0x3da   :  { %1116 = vmatmul.mubr.bf16.gmra.mxu0 %v2320_v59 }
 0x3db   :  { %1123 = vmatprep.mubr.bf16.mxu0 %v2322_v60 }
 0x3e2   :  { %1124 = vmatmul.mubr.bf16.gmra.mxu0 %v2326_v61 }
 0x3e3   :  { %1131 = vmatprep.mubr.bf16.mxu0 %v2328_v62 }
 0x3ea   :  { %1132 = vmatmul.mubr.bf16.gmra.mxu0 %v2332_v0 }
 0x3eb   :  { %1139 = vmatprep.mubr.bf16.mxu0 %v2334_v1 }
 0x3f2   :  { %1140 = vmatmul.mubr.bf16.gmra.mxu0 %v2338_v4  ;;  %v2057_v4 = vld [vmem:[#allocation5 + $0x8] sm:$0xff] }
 0x3f3   :  { %1147 = vmatprep.mubr.bf16.mxu0 %v2340_v5 }
 0x3fa   :  { %1148 = vmatmul.mubr.bf16.gmra.mxu0 %v2344_v8 }
 0x3fb   :  { %1155 = vmatprep.mubr.bf16.mxu0 %v2346_v9 }
 0x402   :  { %1156 = vmatmul.mubr.bf16.gmra.mxu0 %v2350_v10 }
 0x403   :  { %1163 = vmatprep.mubr.bf16.mxu0 %v2352_v11 }
 0x40a   :  { %1164 = vmatmul.mubr.bf16.gmra.mxu0 %v2629_v43 }
 0x40b   :  { %1171 = vmatprep.mubr.bf16.mxu0 %v2630_v45 }
 0x412   :  { %1172 = vmatmul.mubr.bf16.gmra.mxu0 %v2631_v46 }
 0x413   :  { %1179 = vmatprep.mubr.bf16.mxu0 %v2632_v47 }
 0x41a   :  { %1180 = vmatmul.mubr.bf16.gmra.mxu0 %v2633_v48 }
 0x462   :  { %v1791_v49 = vpop.f32.mrf.mxu0 }
 0x464   :  { %v1792_v50 = vpop.f32.mrf.mxu0 }
 0x465   :  { %v1793_v52 = vadd.f32 %v1792_v50, %v1791_v49  ;;  %v2064_v49 = vld [vmem:[#allocation5 + $0x40] sm:$0xff] }
 0x466   :  { %v1794_v53 = vpop.f32.mrf.mxu0 }
 0x467   :  { %v1062_v54 = vadd.f32 %v1793_v52, %v2443_v51 }
 0x468   :  { %v1795_v55 = vpop.f32.mrf.mxu0 }
 0x469   :  { %v1796_v57 = vadd.f32 %v1795_v55, %v1794_v53  ;;  %v1349_v59 = vsub.f32 %v1062_v54, %v2056_v58  ;;  %1188 = vst [vmem:[#allocation10] sm:$0xff] %v1062_v54  ;;  %v2065_v58 = vld [vmem:[#allocation5 + $0x48] sm:$0xff] }
 0x46a   :  { %v1797_v60 = vpop.f32.mrf.mxu0 }
 0x46b   :  { %v1065_v61 = vadd.f32 %v1796_v57, %v2443_v51  ;;  %v1413_v62 = vmul.f32 %v1349_v59, %v1349_v59 }
 0x46c   :  { %v1798_v0 = vpop.f32.mrf.mxu0 }
 0x46d   :  { %1189 = vst [vmem:[#allocation10 + $0x8] sm:$0xff] %v1065_v61  ;;  %v1799_v1 = vadd.f32 %v1798_v0, %v1797_v60  ;;  %1445 = vadd.xlane.f32.xlu0 %v1413_v62  ;;  %v1350_v5 = vsub.f32 %v1065_v61, %v2057_v4  ;;  %v2066_v4 = vld [vmem:[#allocation5 + $0x50] sm:$0xff] }
 0x46e   :  { %v1800_v8 = vpop.f32.mrf.mxu0 }
 0x46f   :  { %v1414_v9 = vmul.f32 %v1350_v5, %v1350_v5  ;;  %v1070_v10 = vadd.f32 %v1799_v1, %v2443_v51 }
 0x470   :  { %v1801_v11 = vpop.f32.mrf.mxu0 }
 0x471   :  { %v1802_v12 = vadd.f32 %v1801_v11, %v1800_v8  ;;  %1447 = vadd.xlane.f32.xlu0 %v1414_v9  ;;  %v1351_v14 = vsub.f32 %v1070_v10, %v2058_v13  ;;  %1190 = vst [vmem:[#allocation10 + $0x10] sm:$0xff] %v1070_v10  ;;  %v2067_v13 = vld [vmem:[#allocation5 + $0x58] sm:$0xff] }
 0x472   :  { %v1803_v15 = vpop.f32.mrf.mxu0 }
 0x473   :  { %v1073_v16 = vadd.f32 %v1802_v12, %v2443_v51  ;;  %v1415_v42 = vmul.f32 %v1351_v14, %v1351_v14 }
 0x474   :  { %v1804_v63 = vpop.f32.mrf.mxu0 }
 0x475   :  { %1191 = vst [vmem:[#allocation10 + $0x18] sm:$0xff] %v1073_v16  ;;  %v1805_v7 = vadd.f32 %v1804_v63, %v1803_v15  ;;  %1449 = vadd.xlane.f32.xlu1 %v1415_v42  ;;  %v1352_v19 = vsub.f32 %v1073_v16, %v2059_v18  ;;  %v2068_v18 = vld [vmem:[#allocation5 + $0x60] sm:$0xff] }
 0x476   :  { %v1806_v21 = vpop.f32.mrf.mxu0 }
 0x477   :  { %v1078_v20 = vadd.f32 %v1805_v7, %v2443_v51  ;;  %v1416_v22 = vmul.f32 %v1352_v19, %v1352_v19 }
 0x478   :  { %v1807_v24 = vpop.f32.mrf.mxu0 }
 0x479   :  { %1192 = vst [vmem:[#allocation10 + $0x20] sm:$0xff] %v1078_v20  ;;  %v1808_v56 = vadd.f32 %v1807_v24, %v1806_v21  ;;  %1451 = vadd.xlane.f32.xlu1 %v1416_v22  ;;  %v1353_v27 = vsub.f32 %v1078_v20, %v2060_v26  ;;  %v2069_v26 = vld [vmem:[#allocation5 + $0x68] sm:$0xff] }
 0x47a   :  { %v1809_v28 = vpop.f32.mrf.mxu0 }
 0x47b   :  { %v1081_v29 = vadd.f32 %v1808_v56, %v2443_v51  ;;  %v1417_v30 = vmul.f32 %v1353_v27, %v1353_v27 }
 0x47c   :  { %v1810_v31 = vpop.f32.mrf.mxu0 }
 0x47d   :  { %1193 = vst [vmem:[#allocation10 + $0x28] sm:$0xff] %v1081_v29  ;;  %v1811_v32 = vadd.f32 %v1810_v31, %v1809_v28  ;;  %v1354_v34 = vsub.f32 %v1081_v29, %v2061_v33  ;;  %1453 = vadd.xlane.f32.xlu0 %v1417_v30  ;;  %v2070_v33 = vld [vmem:[#allocation5 + $0x70] sm:$0xff] }
 0x47e   :  { %v1812_v35 = vpop.f32.mrf.mxu0 }
 0x47f   :  { %v1086_v36 = vadd.f32 %v1811_v32, %v2443_v51  ;;  %v1418_v37 = vmul.f32 %v1354_v34, %v1354_v34 }
 0x480   :  { %v1813_v38 = vpop.f32.mrf.mxu0 }
 0x481   :  { %1194 = vst [vmem:[#allocation10 + $0x30] sm:$0xff] %v1086_v36  ;;  %v1814_v39 = vadd.f32 %v1813_v38, %v1812_v35  ;;  %1455 = vadd.xlane.f32.xlu1 %v1418_v37  ;;  %v1355_v41 = vsub.f32 %v1086_v36, %v2062_v40  ;;  %v2071_v40 = vld [vmem:[#allocation5 + $0x78] sm:$0xff] }
 0x482   :  { %v1815_v44 = vpop.f32.mrf.mxu0 }
 0x483   :  { %v1089_v2 = vadd.f32 %v1814_v39, %v2443_v51  ;;  %v1419_v3 = vmul.f32 %v1355_v41, %v1355_v41 }
 0x484   :  { %v1816_v6 = vpop.f32.mrf.mxu0 }
 0x485   :  { %1195 = vst [vmem:[#allocation10 + $0x38] sm:$0xff] %v1089_v2  ;;  %v1817_v17 = vadd.f32 %v1816_v6, %v1815_v44  ;;  %v1356_v25 = vsub.f32 %v1089_v2, %v2063_v23  ;;  %1457 = vadd.xlane.f32.xlu0 %v1419_v3  ;;  %v2072_v23 = vld [vmem:[#allocation5 + $0x80] sm:$0xff] }
 0x486   :  { %v1818_v43 = vpop.f32.mrf.mxu0 }
 0x487   :  { %v1094_v45 = vadd.f32 %v1817_v17, %v2443_v51  ;;  %v1420_v46 = vmul.f32 %v1356_v25, %v1356_v25 }
 0x488   :  { %v1819_v47 = vpop.f32.mrf.mxu0 }
 0x489   :  { %1196 = vst [vmem:[#allocation10 + $0x40] sm:$0xff] %v1094_v45  ;;  %v1820_v48 = vadd.f32 %v1819_v47, %v1818_v43  ;;  %1459 = vadd.xlane.f32.xlu1 %v1420_v46  ;;  %v1357_v50 = vsub.f32 %v1094_v45, %v2064_v49  ;;  %v2073_v49 = vld [vmem:[#allocation5 + $0x88] sm:$0xff] }
 0x48a   :  { %v1821_v52 = vpop.f32.mrf.mxu0 }
 0x48b   :  { %v1097_v53 = vadd.f32 %v1820_v48, %v2443_v51  ;;  %v1421_v54 = vmul.f32 %v1357_v50, %v1357_v50 }
 0x48c   :  { %v1822_v55 = vpop.f32.mrf.mxu0 }
 0x48d   :  { %1197 = vst [vmem:[#allocation10 + $0x48] sm:$0xff] %v1097_v53  ;;  %v1823_v57 = vadd.f32 %v1822_v55, %v1821_v52  ;;  %v1358_v59 = vsub.f32 %v1097_v53, %v2065_v58  ;;  %1461 = vadd.xlane.f32.xlu0 %v1421_v54  ;;  %v2074_v58 = vld [vmem:[#allocation5 + $0x90] sm:$0xff] }
 0x48e   :  { %v1824_v60 = vpop.f32.mrf.mxu0 }
 0x48f   :  { %v1102_v61 = vadd.f32 %v1823_v57, %v2443_v51  ;;  %v1422_v62 = vmul.f32 %v1358_v59, %v1358_v59 }
 0x490   :  { %v1825_v0 = vpop.f32.mrf.mxu0 }
 0x491   :  { %1198 = vst [vmem:[#allocation10 + $0x50] sm:$0xff] %v1102_v61  ;;  %v1826_v1 = vadd.f32 %v1825_v0, %v1824_v60  ;;  %1463 = vadd.xlane.f32.xlu1 %v1422_v62  ;;  %v1359_v5 = vsub.f32 %v1102_v61, %v2066_v4  ;;  %v2075_v4 = vld [vmem:[#allocation5 + $0x98] sm:$0xff] }
 0x492   :  { %v1827_v8 = vpop.f32.mrf.mxu0 }
 0x493   :  { %v1105_v9 = vadd.f32 %v1826_v1, %v2443_v51  ;;  %v1423_v10 = vmul.f32 %v1359_v5, %v1359_v5 }
 0x494   :  { %v1828_v11 = vpop.f32.mrf.mxu0 }
 0x495   :  { %1199 = vst [vmem:[#allocation10 + $0x58] sm:$0xff] %v1105_v9  ;;  %v1829_v12 = vadd.f32 %v1828_v11, %v1827_v8  ;;  %v1360_v14 = vsub.f32 %v1105_v9, %v2067_v13  ;;  %1465 = vadd.xlane.f32.xlu0 %v1423_v10  ;;  %v2076_v13 = vld [vmem:[#allocation5 + $0xa0] sm:$0xff] }
 0x496   :  { %v1830_v15 = vpop.f32.mrf.mxu0 }
 0x497   :  { %v1110_v16 = vadd.f32 %v1829_v12, %v2443_v51  ;;  %v1424_v42 = vmul.f32 %v1360_v14, %v1360_v14 }
 0x498   :  { %v1831_v63 = vpop.f32.mrf.mxu0 }
 0x499   :  { %1200 = vst [vmem:[#allocation10 + $0x60] sm:$0xff] %v1110_v16  ;;  %v1832_v7 = vadd.f32 %v1831_v63, %v1830_v15  ;;  %1467 = vadd.xlane.f32.xlu1 %v1424_v42  ;;  %v1361_v19 = vsub.f32 %v1110_v16, %v2068_v18  ;;  %v2077_v18 = vld [vmem:[#allocation5 + $0xa8] sm:$0xff] }
 0x49a   :  { %v1833_v21 = vpop.f32.mrf.mxu0 }
 0x49b   :  { %v1113_v20 = vadd.f32 %v1832_v7, %v2443_v51  ;;  %v1425_v22 = vmul.f32 %v1361_v19, %v1361_v19 }
 0x49c   :  { %v1834_v24 = vpop.f32.mrf.mxu0 }
 0x49d   :  { %1201 = vst [vmem:[#allocation10 + $0x68] sm:$0xff] %v1113_v20  ;;  %v1835_v56 = vadd.f32 %v1834_v24, %v1833_v21  ;;  %v1362_v27 = vsub.f32 %v1113_v20, %v2069_v26  ;;  %1469 = vadd.xlane.f32.xlu0 %v1425_v22  ;;  %v2078_v26 = vld [vmem:[#allocation5 + $0xb0] sm:$0xff] }
 0x49e   :  { %v1836_v28 = vpop.f32.mrf.mxu0 }
 0x49f   :  { %v1118_v29 = vadd.f32 %v1835_v56, %v2443_v51  ;;  %v1426_v30 = vmul.f32 %v1362_v27, %v1362_v27 }
 0x4a0   :  { %v1837_v31 = vpop.f32.mrf.mxu0 }
 0x4a1   :  { %1202 = vst [vmem:[#allocation10 + $0x70] sm:$0xff] %v1118_v29  ;;  %v1838_v32 = vadd.f32 %v1837_v31, %v1836_v28  ;;  %1471 = vadd.xlane.f32.xlu1 %v1426_v30  ;;  %v1363_v34 = vsub.f32 %v1118_v29, %v2070_v33  ;;  %v2079_v33 = vld [vmem:[#allocation5 + $0xb8] sm:$0xff] }
 0x4a2   :  { %v1839_v35 = vpop.f32.mrf.mxu0 }
 0x4a3   :  { %v1121_v36 = vadd.f32 %v1838_v32, %v2443_v51  ;;  %v1427_v37 = vmul.f32 %v1363_v34, %v1363_v34 }
 0x4a4   :  { %v1840_v38 = vpop.f32.mrf.mxu0 }
 0x4a5   :  { %1203 = vst [vmem:[#allocation10 + $0x78] sm:$0xff] %v1121_v36  ;;  %v1841_v39 = vadd.f32 %v1840_v38, %v1839_v35  ;;  %v1364_v41 = vsub.f32 %v1121_v36, %v2071_v40  ;;  %1473 = vadd.xlane.f32.xlu0 %v1427_v37  ;;  %v2080_v40 = vld [vmem:[#allocation5 + $0xc0] sm:$0xff] }
 0x4a6   :  { %v1842_v44 = vpop.f32.mrf.mxu0 }
 0x4a7   :  { %v1126_v2 = vadd.f32 %v1841_v39, %v2443_v51  ;;  %v1428_v3 = vmul.f32 %v1364_v41, %v1364_v41 }
 0x4a8   :  { %v1843_v6 = vpop.f32.mrf.mxu0 }
 0x4a9   :  { %1204 = vst [vmem:[#allocation10 + $0x80] sm:$0xff] %v1126_v2  ;;  %v1844_v17 = vadd.f32 %v1843_v6, %v1842_v44  ;;  %1475 = vadd.xlane.f32.xlu1 %v1428_v3  ;;  %v1365_v25 = vsub.f32 %v1126_v2, %v2072_v23  ;;  %v2081_v23 = vld [vmem:[#allocation5 + $0xc8] sm:$0xff] }
 0x4aa   :  { %v1845_v43 = vpop.f32.mrf.mxu0 }
 0x4ab   :  { %v1129_v45 = vadd.f32 %v1844_v17, %v2443_v51  ;;  %v1429_v46 = vmul.f32 %v1365_v25, %v1365_v25 }
 0x4ac   :  { %v1846_v47 = vpop.f32.mrf.mxu0 }
 0x4ad   :  { %1205 = vst [vmem:[#allocation10 + $0x88] sm:$0xff] %v1129_v45  ;;  %v1847_v48 = vadd.f32 %v1846_v47, %v1845_v43  ;;  %v1366_v50 = vsub.f32 %v1129_v45, %v2073_v49  ;;  %1477 = vadd.xlane.f32.xlu0 %v1429_v46 }
 0x4ae   :  { %v1848_v52 = vpop.f32.mrf.mxu0 }
 0x4af   :  { %v1134_v53 = vadd.f32 %v1847_v48, %v2443_v51  ;;  %v1430_v54 = vmul.f32 %v1366_v50, %v1366_v50  ;;  %v2082_v50 = vld [vmem:[#allocation5 + $0xd0] sm:$0xff] }
 0x4b0   :  { %v1849_v55 = vpop.f32.mrf.mxu0 }
 0x4b1   :  { %1206 = vst [vmem:[#allocation10 + $0x90] sm:$0xff] %v1134_v53  ;;  %v1850_v57 = vadd.f32 %v1849_v55, %v1848_v52  ;;  %1479 = vadd.xlane.f32.xlu1 %v1430_v54  ;;  %v1367_v59 = vsub.f32 %v1134_v53, %v2074_v58 }
 0x4b2   :  { %v1851_v60 = vpop.f32.mrf.mxu0 }
 0x4b3   :  { %v1137_v61 = vadd.f32 %v1850_v57, %v2443_v51  ;;  %v1431_v62 = vmul.f32 %v1367_v59, %v1367_v59  ;;  %v2083_v59 = vld [vmem:[#allocation5 + $0xd8] sm:$0xff] }
 0x4b4   :  { %v1852_v0 = vpop.f32.mrf.mxu0 }
 0x4b5   :  { %1207 = vst [vmem:[#allocation10 + $0x98] sm:$0xff] %v1137_v61  ;;  %v1853_v1 = vadd.f32 %v1852_v0, %v1851_v60  ;;  %v1368_v5 = vsub.f32 %v1137_v61, %v2075_v4  ;;  %1481 = vadd.xlane.f32.xlu0 %v1431_v62 }
 0x4b6   :  { %v1854_v8 = vpop.f32.mrf.mxu0 }
 0x4b7   :  { %v1142_v9 = vadd.f32 %v1853_v1, %v2443_v51  ;;  %v1432_v10 = vmul.f32 %v1368_v5, %v1368_v5 }
 0x4b8   :  { %v1855_v11 = vpop.f32.mrf.mxu0 }
 0x4b9   :  { %1208 = vst [vmem:[#allocation10 + $0xa0] sm:$0xff] %v1142_v9  ;;  %v1856_v12 = vadd.f32 %v1855_v11, %v1854_v8  ;;  %1483 = vadd.xlane.f32.xlu1 %v1432_v10  ;;  %v1369_v14 = vsub.f32 %v1142_v9, %v2076_v13  ;;  %v2084_v9 = vld [vmem:[#allocation5 + $0xe0] sm:$0xff] }
 0x4ba   :  { %v1857_v15 = vpop.f32.mrf.mxu0 }
 0x4bb   :  { %v1145_v16 = vadd.f32 %v1856_v12, %v2443_v51  ;;  %v1433_v42 = vmul.f32 %v1369_v14, %v1369_v14 }
 0x4bc   :  { %v1858_v63 = vpop.f32.mrf.mxu0 }
 0x4bd   :  { %1209 = vst [vmem:[#allocation10 + $0xa8] sm:$0xff] %v1145_v16  ;;  %v1859_v7 = vadd.f32 %v1858_v63, %v1857_v15  ;;  %v1370_v19 = vsub.f32 %v1145_v16, %v2077_v18  ;;  %1485 = vadd.xlane.f32.xlu0 %v1433_v42  ;;  %v2085_v16 = vld [vmem:[#allocation5 + $0xe8] sm:$0xff] }
 0x4be   :  { %v1860_v21 = vpop.f32.mrf.mxu0 }
 0x4bf   :  { %v1150_v20 = vadd.f32 %v1859_v7, %v2443_v51  ;;  %v1434_v22 = vmul.f32 %v1370_v19, %v1370_v19 }
 0x4c0   :  { %v1861_v24 = vpop.f32.mrf.mxu0 }
 0x4c1   :  { %1210 = vst [vmem:[#allocation10 + $0xb0] sm:$0xff] %v1150_v20  ;;  %v1862_v56 = vadd.f32 %v1861_v24, %v1860_v21  ;;  %1487 = vadd.xlane.f32.xlu1 %v1434_v22  ;;  %v1371_v27 = vsub.f32 %v1150_v20, %v2078_v26  ;;  %v2086_v24 = vld [vmem:[#allocation5 + $0xf0] sm:$0xff] }
 0x4c2   :  { %v1863_v28 = vpop.f32.mrf.mxu0 }
 0x4c3   :  { %v1153_v29 = vadd.f32 %v1862_v56, %v2443_v51  ;;  %v1435_v30 = vmul.f32 %v1371_v27, %v1371_v27 }
 0x4c4   :  { %v1864_v31 = vpop.f32.mrf.mxu0 }
 0x4c5   :  { %1211 = vst [vmem:[#allocation10 + $0xb8] sm:$0xff] %v1153_v29  ;;  %v1865_v32 = vadd.f32 %v1864_v31, %v1863_v28  ;;  %v1372_v34 = vsub.f32 %v1153_v29, %v2079_v33  ;;  %1489 = vadd.xlane.f32.xlu0 %v1435_v30  ;;  %v2087_v28 = vld [vmem:[#allocation5 + $0xf8] sm:$0xff] }
 0x4c6   :  { %v1866_v35 = vpop.f32.mrf.mxu0 }
 0x4c7   :  { %v1158_v36 = vadd.f32 %v1865_v32, %v2443_v51  ;;  %v1436_v37 = vmul.f32 %v1372_v34, %v1372_v34 }
 0x4c8   :  { %v1867_v38 = vpop.f32.mrf.mxu0 }
 0x4c9   :  { %1212 = vst [vmem:[#allocation10 + $0xc0] sm:$0xff] %v1158_v36  ;;  %v1868_v39 = vadd.f32 %v1867_v38, %v1866_v35  ;;  %1491 = vadd.xlane.f32.xlu1 %v1436_v37  ;;  %v1373_v41 = vsub.f32 %v1158_v36, %v2080_v40 }
 0x4ca   :  { %v1869_v44 = vpop.f32.mrf.mxu0 }
 0x4cb   :  { %v1161_v2 = vadd.f32 %v1868_v39, %v2443_v51  ;;  %v1437_v3 = vmul.f32 %v1373_v41, %v1373_v41 }
 0x4cc   :  { %v1870_v6 = vpop.f32.mrf.mxu0 }
 0x4cd   :  { %1213 = vst [vmem:[#allocation10 + $0xc8] sm:$0xff] %v1161_v2  ;;  %v1871_v17 = vadd.f32 %v1870_v6, %v1869_v44  ;;  %1493 = vadd.xlane.f32.xlu0 %v1437_v3  ;;  %v1374_v25 = vsub.f32 %v1161_v2, %v2081_v23 }
 0x4ce   :  { %v1872_v43 = vpop.f32.mrf.mxu0 }
 0x4cf   :  { %v1166_v45 = vadd.f32 %v1871_v17, %v2443_v51  ;;  %v1406_v46 = vmul.f32 0.0, %v1374_v25 }
 0x4d0   :  { %v1873_v47 = vpop.f32.mrf.mxu0 }
 0x4d1   :  { %1214 = vst [vmem:[#allocation10 + $0xd0] sm:$0xff] %v1166_v45  ;;  %v1874_v48 = vadd.f32 %v1873_v47, %v1872_v43  ;;  %v1438_v49 = vmul.f32 %v1406_v46, %v1406_v46  ;;  %v1375_v52 = vsub.f32 %v1166_v45, %v2082_v50 }
 0x4d2   :  { %v1875_v53 = vpop.f32.mrf.mxu0 }
 0x4d3   :  { %v1169_v54 = vadd.f32 %v1874_v48, %v2443_v51  ;;  %1495 = vadd.xlane.f32.xlu1 %v1438_v49  ;;  %v1407_v55 = vmul.f32 0.0, %v1375_v52 }
 0x4d4   :  { %v1876_v57 = vpop.f32.mrf.mxu0 }
 0x4d5   :  { %1215 = vst [vmem:[#allocation10 + $0xd8] sm:$0xff] %v1169_v54  ;;  %v1877_v58 = vadd.f32 %v1876_v57, %v1875_v53  ;;  %v1376_v60 = vsub.f32 %v1169_v54, %v2083_v59  ;;  %v1439_v61 = vmul.f32 %v1407_v55, %v1407_v55 }
 0x4d6   :  { %v1878_v62 = vpop.f32.mrf.mxu0 }
 0x4d7   :  { %v1174_v0 = vadd.f32 %v1877_v58, %v2443_v51  ;;  %v1408_v1 = vmul.f32 0.0, %v1376_v60  ;;  %1497 = vadd.xlane.f32.xlu0 %v1439_v61 }
 0x4d8   :  { %v1879_v4 = vpop.f32.mrf.mxu0 }
 0x4d9   :  { %1216 = vst [vmem:[#allocation10 + $0xe0] sm:$0xff] %v1174_v0  ;;  %v1880_v5 = vadd.f32 %v1879_v4, %v1878_v62  ;;  %v1440_v8 = vmul.f32 %v1408_v1, %v1408_v1  ;;  %v1377_v10 = vsub.f32 %v1174_v0, %v2084_v9 }
 0x4da   :  { %v1881_v11 = vpop.f32.mrf.mxu0 }
 0x4db   :  { %v1177_v12 = vadd.f32 %v1880_v5, %v2443_v51  ;;  %1499 = vadd.xlane.f32.xlu1 %v1440_v8  ;;  %v1409_v13 = vmul.f32 0.0, %v1377_v10 }
 0x4dc   :  { %v1882_v14 = vpop.f32.mrf.mxu0 }
 0x4dd   :  { %1217 = vst [vmem:[#allocation10 + $0xe8] sm:$0xff] %v1177_v12  ;;  %v1883_v15 = vadd.f32 %v1882_v14, %v1881_v11  ;;  %v1378_v42 = vsub.f32 %v1177_v12, %v2085_v16  ;;  %v1441_v63 = vmul.f32 %v1409_v13, %v1409_v13 }
 0x4de   :  { %v1884_v7 = vpop.f32.mrf.mxu0 }
 0x4df   :  { %v1182_v18 = vadd.f32 %v1883_v15, %v2443_v51  ;;  %v1410_v19 = vmul.f32 0.0, %v1378_v42  ;;  %1501 = vadd.xlane.f32.xlu0 %v1441_v63 }
 0x4e0   :  { %v1885_v21 = vpop.f32.mrf.mxu0 }
 0x4e1   :  { %1218 = vst [vmem:[#allocation10 + $0xf0] sm:$0xff] %v1182_v18  ;;  %v1886_v20 = vadd.f32 %v1885_v21, %v1884_v7  ;;  %v1442_v22 = vmul.f32 %v1410_v19, %v1410_v19  ;;  %v1379_v56 = vsub.f32 %v1182_v18, %v2086_v24 }
 0x4e3   :  { %v1185_v26 = vadd.f32 %v1886_v20, %v2443_v51  ;;  %1503 = vadd.xlane.f32.xlu1 %v1442_v22  ;;  %v1411_v27 = vmul.f32 0.0, %v1379_v56 }
 0x4e5   :  { %1219 = vst [vmem:[#allocation10 + $0xf8] sm:$0xff] %v1185_v26  ;;  %v1380_v29 = vsub.f32 %v1185_v26, %v2087_v28  ;;  %v1443_v30 = vmul.f32 %v1411_v27, %v1411_v27 }
 0x4e7   :  { %v1412_v31 = vmul.f32 0.0, %v1380_v29  ;;  %1505 = vadd.xlane.f32.xlu0 %v1443_v30 }
 0x4e9   :  { %v1444_v32 = vmul.f32 %v1412_v31, %v1412_v31 }
 0x4eb   :  { %1507 = vadd.xlane.f32.xlu1 %v1444_v32 }
 0x4ec   :  { %2179 = shalt.err (!%p2176_p10)
}
 0x4ed   :  { %1553 = dma.vmem_to_hbm [thread:$0]  %s1548_s24, 4096, %s2617_s6, [#allocation4], %s2198_s29, %s2198_s29, %s2199_s30  }
 0x4f6   :  { %v1446_v51 = vpop.xlane.xlu0 %1445 }
 0x4f7   :  { %1510 = vst.msk [vmem:[%s2618_s7] sm:$0xff] %vm1509_vm0, %v1446_v51 }
 0x4fa   :  { %v1448_v33 = vpop.xlane.xlu0 %1447 }
 0x4fb   :  { %1511 = vst.msk [vmem:[%s2618_s7 + $0x8] sm:$0xff] %vm1509_vm0, %v1448_v33 }
 0x4fe   :  { %v1450_v34 = vpop.xlane.xlu1 %1449 }
 0x4ff   :  { %1512 = vst.msk [vmem:[%s2618_s7 + $0x10] sm:$0xff] %vm1509_vm0, %v1450_v34 }
 0x502   :  { %v1452_v35 = vpop.xlane.xlu1 %1451 }
 0x503   :  { %1513 = vst.msk [vmem:[%s2618_s7 + $0x18] sm:$0xff] %vm1509_vm0, %v1452_v35 }
 0x506   :  { %v1454_v36 = vpop.xlane.xlu0 %1453 }
 0x507   :  { %1514 = vst.msk [vmem:[%s2618_s7 + $0x20] sm:$0xff] %vm1509_vm0, %v1454_v36 }
 0x50a   :  { %v1456_v37 = vpop.xlane.xlu1 %1455 }
 0x50b   :  { %1515 = vst.msk [vmem:[%s2618_s7 + $0x28] sm:$0xff] %vm1509_vm0, %v1456_v37 }
 0x50e   :  { %v1458_v38 = vpop.xlane.xlu0 %1457 }
 0x50f   :  { %1516 = vst.msk [vmem:[%s2618_s7 + $0x30] sm:$0xff] %vm1509_vm0, %v1458_v38 }
 0x512   :  { %v1460_v39 = vpop.xlane.xlu1 %1459 }
 0x513   :  { %1517 = vst.msk [vmem:[%s2618_s7 + $0x38] sm:$0xff] %vm1509_vm0, %v1460_v39 }
 0x516   :  { %v1462_v40 = vpop.xlane.xlu0 %1461 }
 0x517   :  { %1518 = vst.msk [vmem:[%s2618_s7 + $0x40] sm:$0xff] %vm1509_vm0, %v1462_v40 }
 0x51a   :  { %v1464_v41 = vpop.xlane.xlu1 %1463 }
 0x51b   :  { %1519 = vst.msk [vmem:[%s2618_s7 + $0x48] sm:$0xff] %vm1509_vm0, %v1464_v41 }
 0x51e   :  { %v1466_v44 = vpop.xlane.xlu0 %1465 }
 0x51f   :  { %1520 = vst.msk [vmem:[%s2618_s7 + $0x50] sm:$0xff] %vm1509_vm0, %v1466_v44 }
 0x522   :  { %v1468_v2 = vpop.xlane.xlu1 %1467 }
 0x523   :  { %1521 = vst.msk [vmem:[%s2618_s7 + $0x58] sm:$0xff] %vm1509_vm0, %v1468_v2 }
 0x526   :  { %v1470_v3 = vpop.xlane.xlu0 %1469 }
 0x527   :  { %1522 = vst.msk [vmem:[%s2618_s7 + $0x60] sm:$0xff] %vm1509_vm0, %v1470_v3 }
 0x52a   :  { %v1472_v6 = vpop.xlane.xlu1 %1471 }
 0x52b   :  { %1523 = vst.msk [vmem:[%s2618_s7 + $0x68] sm:$0xff] %vm1509_vm0, %v1472_v6 }
 0x52e   :  { %v1474_v17 = vpop.xlane.xlu0 %1473 }
 0x52f   :  { %1524 = vst.msk [vmem:[%s2618_s7 + $0x70] sm:$0xff] %vm1509_vm0, %v1474_v17 }
 0x532   :  { %v1476_v23 = vpop.xlane.xlu1 %1475 }
 0x533   :  { %1525 = vst.msk [vmem:[%s2618_s7 + $0x78] sm:$0xff] %vm1509_vm0, %v1476_v23 }
 0x536   :  { %v1478_v25 = vpop.xlane.xlu0 %1477 }
 0x537   :  { %1526 = vst.msk [vmem:[%s2618_s7 + $0x80] sm:$0xff] %vm1509_vm0, %v1478_v25 }
 0x53a   :  { %v1480_v43 = vpop.xlane.xlu1 %1479 }
 0x53b   :  { %1527 = vst.msk [vmem:[%s2618_s7 + $0x88] sm:$0xff] %vm1509_vm0, %v1480_v43 }
 0x53e   :  { %v1482_v45 = vpop.xlane.xlu0 %1481 }
 0x53f   :  { %1528 = vst.msk [vmem:[%s2618_s7 + $0x90] sm:$0xff] %vm1509_vm0, %v1482_v45 }
 0x542   :  { %v1484_v46 = vpop.xlane.xlu1 %1483 }
 0x543   :  { %1529 = vst.msk [vmem:[%s2618_s7 + $0x98] sm:$0xff] %vm1509_vm0, %v1484_v46 }
 0x546   :  { %v1486_v47 = vpop.xlane.xlu0 %1485 }
 0x547   :  { %1530 = vst.msk [vmem:[%s2618_s7 + $0xa0] sm:$0xff] %vm1509_vm0, %v1486_v47 }
 0x54a   :  { %v1488_v48 = vpop.xlane.xlu1 %1487 }
 0x54b   :  { %1531 = vst.msk [vmem:[%s2618_s7 + $0xa8] sm:$0xff] %vm1509_vm0, %v1488_v48 }
 0x54e   :  { %v1490_v49 = vpop.xlane.xlu0 %1489 }
 0x54f   :  { %1532 = vst.msk [vmem:[%s2618_s7 + $0xb0] sm:$0xff] %vm1509_vm0, %v1490_v49 }
 0x552   :  { %v1492_v50 = vpop.xlane.xlu1 %1491 }
 0x553   :  { %1533 = vst.msk [vmem:[%s2618_s7 + $0xb8] sm:$0xff] %vm1509_vm0, %v1492_v50 }
 0x556   :  { %v1494_v52 = vpop.xlane.xlu0 %1493 }
 0x557   :  { %1534 = vst.msk [vmem:[%s2618_s7 + $0xc0] sm:$0xff] %vm1509_vm0, %v1494_v52 }
 0x55c   :  { %v1496_v53 = vpop.xlane.xlu1 %1495 }
 0x55d   :  { %1535 = vst.msk [vmem:[%s2618_s7 + $0xc8] sm:$0xff] %vm1509_vm0, %v1496_v53 }
 0x560   :  { %v1498_v54 = vpop.xlane.xlu0 %1497 }
 0x561   :  { %1536 = vst.msk [vmem:[%s2618_s7 + $0xd0] sm:$0xff] %vm1509_vm0, %v1498_v54 }
 0x564   :  { %v1500_v55 = vpop.xlane.xlu1 %1499 }
 0x565   :  { %1537 = vst.msk [vmem:[%s2618_s7 + $0xd8] sm:$0xff] %vm1509_vm0, %v1500_v55 }
 0x568   :  { %v1502_v57 = vpop.xlane.xlu0 %1501 }
 0x569   :  { %1538 = vst.msk [vmem:[%s2618_s7 + $0xe0] sm:$0xff] %vm1509_vm0, %v1502_v57 }
 0x56c   :  { %v1504_v58 = vpop.xlane.xlu1 %1503 }
 0x56d   :  { %1539 = vst.msk [vmem:[%s2618_s7 + $0xe8] sm:$0xff] %vm1509_vm0, %v1504_v58 }
 0x570   :  { %v1506_v59 = vpop.xlane.xlu0 %1505 }
 0x571   :  { %1540 = vst.msk [vmem:[%s2618_s7 + $0xf0] sm:$0xff] %vm1509_vm0, %v1506_v59 }
 0x574   :  { %v1508_v60 = vpop.xlane.xlu1 %1507 }
 0x575   :  { %1541 = vst.msk [vmem:[%s2618_s7 + $0xf8] sm:$0xff] %vm1509_vm0, %v1508_v60 }
 0x576   :  { %2194 = dma.done.wait [#allocation4], 4096  }
 0x577   :  { %2195 = vsyncadd [#allocation4], 4294963200 }
 0x578   :  { %1561 = vsyncpa [#allocation3], 1 }
 0x579   :  { %1562 = vsyncpa [#allocation6], 1 }
 0x57a   :  { %1563 = vsyncpa [#allocation9], 1 }
 0x57b   :  { %1564 = vsyncpa [#allocation4], 1 }

</bundles_post_ra>
